<compile_context>
chip_gen: v7x
topology: tpu7x:2x2x1
jax: 0.10.0
libtpu: 0.0.40
codegen_flags: <defaults>
</compile_context>

<pallas_src>
import functools

import numpy as np
import jax
import jax.numpy as jnp
from jax import lax
from jax.experimental import pallas as pl
from jax.experimental.pallas import tpu as pltpu

EPS = 1e-5


# ----------------------------------------------------------------------------
# In-kernel helpers
# ----------------------------------------------------------------------------
def _fill_padded(xpad_ref, val, H, W):
    """Write `val` (G, H, W, C) into the interior of the (G, H+2, W+2, C)
    scratch and zero ONLY the 1-pixel border.  The interior is fully
    overwritten every grid step, so this stays correct under megacore
    'parallel' semantics (each core has its own scratch)."""
    G = xpad_ref.shape[0]
    C = xpad_ref.shape[-1]
    dt = xpad_ref.dtype
    xpad_ref[:, pl.ds(0, 1), :, :] = jnp.zeros((G, 1, W + 2, C), dt)
    xpad_ref[:, pl.ds(H + 1, 1), :, :] = jnp.zeros((G, 1, W + 2, C), dt)
    xpad_ref[:, pl.ds(1, H), pl.ds(0, 1), :] = jnp.zeros((G, H, 1, C), dt)
    xpad_ref[:, pl.ds(1, H), pl.ds(W + 1, 1), :] = jnp.zeros((G, H, 1, C), dt)
    xpad_ref[:, pl.ds(1, H), pl.ds(1, W), :] = val.astype(dt)


def _dw3x3(xpad_ref, w9, bias, Ho, Wo, stride, row_chunk=8):
    """9-tap depthwise 3x3 from the padded scratch; the strided output is
    computed directly.  Accumulation is tiled over output-row chunks so each
    chunk's f32 accumulator stays vreg-resident instead of doing 9 full-image
    read-modify-write passes.  Tap math is f32 (portable to v5e's f32 VALU);
    the scratch itself is kept in the activation dtype for bandwidth.

    w9: (9, C) f32 (BN scale folded in), bias: (C,) f32 (BN shift)."""
    G = xpad_ref.shape[0]
    C = w9.shape[-1]
    f32 = jnp.float32
    chunks = []
    for r0 in range(0, Ho, row_chunk):
        rows = min(row_chunk, Ho - r0)
        acc = jnp.zeros((G, rows, Wo, C), f32)
        for di in range(3):
            for dj in range(3):
                if stride == 1:
                    tap = xpad_ref[:, pl.ds(r0 + di, rows), pl.ds(dj, Wo), :]
                else:
                    # TODO(synk): de-interleave the scratch by column stride
                    # phase so these taps become contiguous loads (perf only).
                    tap = xpad_ref[:, pl.ds(r0 * stride + di, rows, stride=stride),
                                   pl.ds(dj, Wo, stride=stride), :]
                acc = acc + tap.astype(f32) * w9[di * 3 + dj]
        chunks.append(acc + bias)
    return chunks[0] if len(chunks) == 1 else jnp.concatenate(chunks, axis=1)


# ----------------------------------------------------------------------------
# Fused kernels (one pallas_call per block; intermediates stay in VMEM)
# ----------------------------------------------------------------------------
def _block_s1_kernel(x_ref, w1_ref, b1_ref, wd_ref, bd_ref, w2_ref, b2_ref,
                     o_ref, xpad_ref):
    """stride == 1: identity half + branch2; output is written lane-dense in
    concatenated [identity | branch2] order (the channel_shuffle permutation is
    folded into the wrapper's NHWC->NCHW transpose)."""
    G, H, W, _ = x_ref.shape
    Cb = wd_ref.shape[-1]
    f32 = jnp.float32
    cdt = x_ref.dtype          # MXU operand dtype (bf16 if the caller uses bf16)
    odt = o_ref.dtype

    x = x_ref[...]
    x1 = x[..., :Cb]           # identity half
    x2 = x[..., Cb:]           # branch2 input

    # branch2 1x1 conv (+folded BN) + ReLU
    # TODO(synk): for W not a multiple of 8 (7/14/28) pad W in the working
    # layout to avoid a relayout copy on this flatten (perf only).
    y = jnp.dot(x2.reshape(G * H * W, Cb), w1_ref[...],
                preferred_element_type=f32) + b1_ref[...]
    y = jnp.maximum(y, 0.0)

    # branch2 3x3 depthwise conv (+folded BN)
    _fill_padded(xpad_ref, y.reshape(G, H, W, Cb), H, W)
    acc = _dw3x3(xpad_ref, wd_ref[...], bd_ref[0], H, W, 1)

    # branch2 1x1 conv (+folded BN) + ReLU
    z = jnp.dot(acc.reshape(G * H * W, Cb).astype(cdt), w2_ref[...],
                preferred_element_type=f32) + b2_ref[...]
    b2 = jnp.maximum(z, 0.0).reshape(G, H, W, Cb)

    o_ref[...] = jnp.concatenate([x1.astype(odt), b2.astype(odt)], axis=-1)


def _block_sn_kernel(x_ref, wd1_ref, bd1_ref, w1_ref, b1_ref,
                     w21_ref, b21_ref, wd2_ref, bd2_ref, w22_ref, b22_ref,
                     o_ref, xpad1_ref, xpad2_ref, *, stride):
    """stride > 1: both branches fused; x is read from HBM once; the strided
    depthwise outputs are computed directly; output is written lane-dense in
    concatenated [branch1 | branch2] order."""
    G, H, W, Cin = x_ref.shape
    _, Ho, Wo, Cout = o_ref.shape
    Cb = Cout // 2
    f32 = jnp.float32
    cdt = x_ref.dtype
    odt = o_ref.dtype

    x = x_ref[...]

    # ---- branch1: dw3x3(stride) + BN  ->  1x1 conv + BN + ReLU
    _fill_padded(xpad1_ref, x, H, W)
    acc1 = _dw3x3(xpad1_ref, wd1_ref[...], bd1_ref[0], Ho, Wo, stride)
    h1 = jnp.dot(acc1.reshape(G * Ho * Wo, Cin).astype(cdt), w1_ref[...],
                 preferred_element_type=f32) + b1_ref[...]
    b1 = jnp.maximum(h1, 0.0).reshape(G, Ho, Wo, Cb)

    # ---- branch2: 1x1+BN+ReLU -> dw3x3(stride)+BN -> 1x1+BN+ReLU
    y = jnp.dot(x.reshape(G * H * W, Cin), w21_ref[...],
                preferred_element_type=f32) + b21_ref[...]
    y = jnp.maximum(y, 0.0)
    _fill_padded(xpad2_ref, y.reshape(G, H, W, Cb), H, W)
    acc2 = _dw3x3(xpad2_ref, wd2_ref[...], bd2_ref[0], Ho, Wo, stride)
    h2 = jnp.dot(acc2.reshape(G * Ho * Wo, Cb).astype(cdt), w22_ref[...],
                 preferred_element_type=f32) + b22_ref[...]
    b2 = jnp.maximum(h2, 0.0).reshape(G, Ho, Wo, Cb)

    o_ref[...] = jnp.concatenate([b1.astype(odt), b2.astype(odt)], axis=-1)


# ----------------------------------------------------------------------------
# Parameter folding (eval BN -> conv weights/bias)
# ----------------------------------------------------------------------------
def _bn_scale_shift(bn):
    scale = bn["gamma"] / jnp.sqrt(bn["var"] + EPS)
    shift = bn["beta"] - bn["mean"] * scale
    return scale.astype(jnp.float32), shift.astype(jnp.float32)


def _fold_pw(w_oihw, bn):
    """1x1 conv (OIHW, no bias) + eval BN -> (Cin, Cout) matmul weight, (1, Cout) bias."""
    scale, shift = _bn_scale_shift(bn)
    Cout, Cin = w_oihw.shape[:2]
    wm = w_oihw.reshape(Cout, Cin).T.astype(jnp.float32) * scale[None, :]
    return wm, shift.reshape(1, Cout)


def _fold_dw(w_c133, bn):
    """3x3 depthwise conv (C,1,3,3) + eval BN -> (9, C) tap weights, (1, C) bias."""
    scale, shift = _bn_scale_shift(bn)
    C = w_c133.shape[0]
    w9 = w_c133.reshape(C, 9).T.astype(jnp.float32) * scale[None, :]
    return w9, shift.reshape(1, C)


def _choose_images_per_step(N, per_image_bytes, budget_bytes=24 << 20):
    """Largest divisor of N whose per-step working set fits the budget, while
    keeping >= 2 grid steps when possible (v7x megacore + DMA/compute overlap)."""
    g = 1
    for d in range(1, N + 1):
        if N % d:
            continue
        if d * per_image_bytes > budget_bytes:
            break
        if d == 1 or N // d >= 2:
            g = d
    return g


# ----------------------------------------------------------------------------
# InvertedResidual forward (Pallas-backed), NCHW in / NCHW out
# ----------------------------------------------------------------------------
def inverted_residual_forward(x_nchw, params, inp, oup, stride,
                              images_per_step=None):
    assert 1 <= stride <= 3
    Cb = oup // 2
    if stride == 1:
        assert inp == Cb << 1
    N, C, H, W = x_nchw.shape
    assert C == inp
    Ho = (H - 1) // stride + 1
    Wo = (W - 1) // stride + 1

    # NHWC internally (channels on lanes).  Activations keep the caller's
    # dtype so bf16 inputs take the bf16 MXU path; accumulation is f32.
    x = jnp.transpose(x_nchw, (0, 2, 3, 1))
    dt = x.dtype
    itemsize = jnp.dtype(dt).itemsize

    # Rough per-image VMEM footprint (double-buffered I/O + padded scratch +
    # f32 live intermediates), used to size G against a ~24 MiB budget so the
    # kernel also fits v7x's 64 MiB physical VMEM with headroom.
    scr_ch = Cb if stride == 1 else (inp + Cb)
    per_img = (2 * itemsize * (H * W * inp + Ho * Wo * oup)
               + itemsize * (H + 2) * (W + 2) * scr_ch
               + 4 * (H * W * Cb + 3 * Ho * Wo * oup))
    if images_per_step is None:
        G = _choose_images_per_step(N, per_img)
    else:
        G = images_per_step
    assert N % G == 0

    cparams = pltpu.CompilerParams(
        dimension_semantics=("parallel",),
        vmem_limit_bytes=48 * 1024 * 1024,   # above the 16/32 MiB scoped default,
                                             # below v7x's 64 MiB physical VMEM
    )

    if stride == 1:
        w1, b1 = _fold_pw(params["b2_pw1_w"], params["b2_bn1"])
        wd, bd = _fold_dw(params["b2_dw_w"], params["b2_bn2"])
        w2, b2 = _fold_pw(params["b2_pw2_w"], params["b2_bn3"])
        w1 = w1.astype(dt)                   # MXU operands in activation dtype
        w2 = w2.astype(dt)

        flops = N * H * W * (4 * Cb * Cb + 18 * Cb)
        bytes_accessed = (N * H * W * (inp + oup) * itemsize
                          + sum(int(a.size) * a.dtype.itemsize
                                for a in (w1, b1, wd, bd, w2, b2)))

        out = pl.pallas_call(
            _block_s1_kernel,
            out_shape=jax.ShapeDtypeStruct((N, H, W, oup), dt),
            grid=(N // G,),
            in_specs=[
                pl.BlockSpec((G, H, W, inp), lambda n: (n, 0, 0, 0)),
                pl.BlockSpec((Cb, Cb), lambda n: (0, 0)),   # pw1 weight
                pl.BlockSpec((1, Cb), lambda n: (0, 0)),    # pw1 bias (f32)
                pl.BlockSpec((9, Cb), lambda n: (0, 0)),    # dw taps (f32)
                pl.BlockSpec((1, Cb), lambda n: (0, 0)),    # dw bias (f32)
                pl.BlockSpec((Cb, Cb), lambda n: (0, 0)),   # pw2 weight
                pl.BlockSpec((1, Cb), lambda n: (0, 0)),    # pw2 bias (f32)
            ],
            out_specs=pl.BlockSpec((G, H, W, oup), lambda n: (n, 0, 0, 0)),
            scratch_shapes=[pltpu.VMEM((G, H + 2, W + 2, Cb), dt)],
            compiler_params=cparams,
            cost_estimate=pl.CostEstimate(flops=flops, transcendentals=0,
                                          bytes_accessed=bytes_accessed),
        )(x, w1, b1, wd, bd, w2, b2)
    else:
        wd1, bd1 = _fold_dw(params["b1_dw_w"], params["b1_bn1"])
        w1b, b1b = _fold_pw(params["b1_pw_w"], params["b1_bn2"])
        w21, b21 = _fold_pw(params["b2_pw1_w"], params["b2_bn1"])
        wd2, bd2 = _fold_dw(params["b2_dw_w"], params["b2_bn2"])
        w22, b22 = _fold_pw(params["b2_pw2_w"], params["b2_bn3"])
        w1b = w1b.astype(dt)
        w21 = w21.astype(dt)
        w22 = w22.astype(dt)

        flops = N * (Ho * Wo * (18 * inp + 2 * inp * Cb + 18 * Cb + 2 * Cb * Cb)
                     + H * W * 2 * inp * Cb)
        bytes_accessed = (N * (H * W * inp + Ho * Wo * oup) * itemsize
                          + sum(int(a.size) * a.dtype.itemsize for a in
                                (wd1, bd1, w1b, b1b, w21, b21, wd2, bd2, w22, b22)))

        out = pl.pallas_call(
            functools.partial(_block_sn_kernel, stride=stride),
            out_shape=jax.ShapeDtypeStruct((N, Ho, Wo, oup), dt),
            grid=(N // G,),
            in_specs=[
                pl.BlockSpec((G, H, W, inp), lambda n: (n, 0, 0, 0)),
                pl.BlockSpec((9, inp), lambda n: (0, 0)),    # branch1 dw taps
                pl.BlockSpec((1, inp), lambda n: (0, 0)),    # branch1 dw bias
                pl.BlockSpec((inp, Cb), lambda n: (0, 0)),   # branch1 pw weight
                pl.BlockSpec((1, Cb), lambda n: (0, 0)),     # branch1 pw bias
                pl.BlockSpec((inp, Cb), lambda n: (0, 0)),   # branch2 pw1 weight
                pl.BlockSpec((1, Cb), lambda n: (0, 0)),     # branch2 pw1 bias
                pl.BlockSpec((9, Cb), lambda n: (0, 0)),     # branch2 dw taps
                pl.BlockSpec((1, Cb), lambda n: (0, 0)),     # branch2 dw bias
                pl.BlockSpec((Cb, Cb), lambda n: (0, 0)),    # branch2 pw2 weight
                pl.BlockSpec((1, Cb), lambda n: (0, 0)),     # branch2 pw2 bias
            ],
            out_specs=pl.BlockSpec((G, Ho, Wo, oup), lambda n: (n, 0, 0, 0)),
            scratch_shapes=[pltpu.VMEM((G, H + 2, W + 2, inp), dt),
                            pltpu.VMEM((G, H + 2, W + 2, Cb), dt)],
            compiler_params=cparams,
            cost_estimate=pl.CostEstimate(flops=flops, transcendentals=0,
                                          bytes_accessed=bytes_accessed),
        )(x, wd1, bd1, w1b, b1b, w21, b21, wd2, bd2, w22, b22)

    # channel_shuffle(groups=2) folded into the NHWC->NCHW transpose we need
    # anyway: concat channel g*Cb+c  ->  shuffled NCHW channel 2*c+g.
    out5 = out.reshape(N, Ho, Wo, 2, Cb)
    return jnp.transpose(out5, (0, 4, 3, 1, 2)).reshape(N, oup, Ho, Wo)


# ----------------------------------------------------------------------------
# Deterministic parameter init (shapes follow the PyTorch module __init__)
# ----------------------------------------------------------------------------
def init_params(key, inp, oup, stride):
    branch_features = oup // 2
    keys = jax.random.split(key, 16)

    def conv_w(k, o, i, kh, kw):
        fan_in = i * kh * kw
        return (jax.random.normal(k, (o, i, kh, kw), jnp.float32)
                / np.sqrt(float(fan_in)))

    def bn_p(k, c):
        k1, k2, k3, k4 = jax.random.split(k, 4)
        return dict(
            gamma=1.0 + 0.1 * jax.random.normal(k1, (c,), jnp.float32),
            beta=0.1 * jax.random.normal(k2, (c,), jnp.float32),
            mean=0.1 * jax.random.normal(k3, (c,), jnp.float32),
            var=jax.random.uniform(k4, (c,), jnp.float32, 0.5, 1.5),
        )

    p = {}
    if stride > 1:
        p["b1_dw_w"] = conv_w(keys[0], inp, 1, 3, 3)        # depthwise: groups=inp
        p["b1_bn1"] = bn_p(keys[1], inp)
        p["b1_pw_w"] = conv_w(keys[2], branch_features, inp, 1, 1)
        p["b1_bn2"] = bn_p(keys[3], branch_features)
    cin2 = inp if stride > 1 else branch_features
    p["b2_pw1_w"] = conv_w(keys[4], branch_features, cin2, 1, 1)
    p["b2_bn1"] = bn_p(keys[5], branch_features)
    p["b2_dw_w"] = conv_w(keys[6], branch_features, 1, 3, 3)
    p["b2_bn2"] = bn_p(keys[7], branch_features)
    p["b2_pw2_w"] = conv_w(keys[8], branch_features, branch_features, 1, 1)
    p["b2_bn3"] = bn_p(keys[9], branch_features)
    return p


# ----------------------------------------------------------------------------
# Pure-JAX reference (lax convs) for validation
# ----------------------------------------------------------------------------
def _channel_shuffle_ref(x, groups):
    N, C, H, W = x.shape
    return (x.reshape(N, groups, C // groups, H, W)
             .transpose(0, 2, 1, 3, 4)
             .reshape(N, C, H, W))


def ref_forward(x, p, inp, oup, stride):
    Cb = oup // 2

    def bn(z, b):
        s = b["gamma"] / jnp.sqrt(b["var"] + EPS)
        sh = b["beta"] - b["mean"] * s
        return z * s[None, :, None, None] + sh[None, :, None, None]

    def pw(z, w):
        return lax.conv_general_dilated(
            z, w, (1, 1), "VALID", dimension_numbers=("NCHW", "OIHW", "NCHW"))

    def dw(z, w, s):
        return lax.conv_general_dilated(
            z, w, (s, s), ((1, 1), (1, 1)),
            dimension_numbers=("NCHW", "OIHW", "NCHW"),
            feature_group_count=z.shape[1])

    def branch2(z):
        z = jax.nn.relu(bn(pw(z, p["b2_pw1_w"]), p["b2_bn1"]))
        z = bn(dw(z, p["b2_dw_w"], stride), p["b2_bn2"])
        z = jax.nn.relu(bn(pw(z, p["b2_pw2_w"]), p["b2_bn3"]))
        return z

    if stride == 1:
        x1, x2 = x[:, :Cb], x[:, Cb:]
        out = jnp.concatenate([x1, branch2(x2)], axis=1)
    else:
        b1 = bn(dw(x, p["b1_dw_w"], stride), p["b1_bn1"])
        b1 = jax.nn.relu(bn(pw(b1, p["b1_pw_w"]), p["b1_bn2"]))
        out = jnp.concatenate([b1, branch2(x)], axis=1)
    return _channel_shuffle_ref(out, 2)


# ----------------------------------------------------------------------------
if __name__ == "__main__":
    key = jax.random.PRNGKey(0)
    kx, kp1, kp2 = jax.random.split(key, 3)

    # Case 1: stride=1 (inp == oup // 2 << 1), identity branch1.  f32, exact-ish.
    x1 = jax.random.normal(kx, (2, 4, 16, 16), jnp.float32)
    inp, oup, stride = 4, 4, 1
    p1 = init_params(kp1, inp, oup, stride)
    out1 = jax.block_until_ready(inverted_residual_forward(x1, p1, inp, oup, stride))
    ref1 = jax.block_until_ready(ref_forward(x1, p1, inp, oup, stride))
    assert out1.shape == (2, 4, 16, 16)
    np.testing.assert_allclose(np.asarray(out1), np.asarray(ref1), atol=1e-4, rtol=1e-4)

    # Case 2: stride=2 downsampling block, batch 4 (heuristic picks 2 images per
    # grid step -> exercises the batched-per-step path).  f32, exact-ish.
    x2 = jax.random.normal(kx, (4, 4, 16, 16), jnp.float32)
    inp, oup, stride = 4, 8, 2
    p2 = init_params(kp2, inp, oup, stride)
    out2 = jax.block_until_ready(inverted_residual_forward(x2, p2, inp, oup, stride))
    ref2 = jax.block_until_ready(ref_forward(x2, p2, inp, oup, stride))
    assert out2.shape == (4, 8, 8, 8)
    np.testing.assert_allclose(np.asarray(out2), np.asarray(ref2), atol=1e-4, rtol=1e-4)

    # Case 3: bf16 activations -> bf16 MXU operands (f32 accumulation).  Looser
    # tolerance, as expected for bf16 inference numerics.
    out3 = jax.block_until_ready(
        inverted_residual_forward(x2.astype(jnp.bfloat16), p2, inp, oup, stride))
    np.testing.assert_allclose(np.asarray(out3.astype(jnp.float32)),
                               np.asarray(ref2), atol=0.15, rtol=0.1)

    print("KERNEL_OK")
</pallas_src>

<mosaic_0001>
module attributes {stable_mosaic.version = 11 : i64} {
  func.func @_block_s1_kernel(%arg0: i32, %arg1: memref<1x16x16x4xf32, #tpu.memory_space<vmem>>, %arg2: memref<2x2xf32, #tpu.memory_space<vmem>>, %arg3: memref<1x2xf32, #tpu.memory_space<vmem>>, %arg4: memref<9x2xf32, #tpu.memory_space<vmem>>, %arg5: memref<1x2xf32, #tpu.memory_space<vmem>>, %arg6: memref<2x2xf32, #tpu.memory_space<vmem>>, %arg7: memref<1x2xf32, #tpu.memory_space<vmem>>, %arg8: memref<1x16x16x4xf32, #tpu.memory_space<vmem>>, %arg9: memref<1x18x18x2xf32, #tpu.memory_space<vmem>>) attributes {dimension_semantics = [#tpu.dimension_semantics<parallel>], iteration_bounds = array<i64: 2>, scalar_prefetch = 0 : i64, scratch_operands = 1 : i64, tpu.core_type = #tpu.core_type<tc>, window_params = [{transform_indices = @transform_0, window_bounds = array<i64: 1, 16, 16, 4>}, {pipeline_mode = #tpu.pipeline_mode<synchronous>, transform_indices = @transform_1, window_bounds = array<i64: 2, 2>}, {pipeline_mode = #tpu.pipeline_mode<synchronous>, transform_indices = @transform_2, window_bounds = array<i64: 1, 2>}, {pipeline_mode = #tpu.pipeline_mode<synchronous>, transform_indices = @transform_3, window_bounds = array<i64: 9, 2>}, {pipeline_mode = #tpu.pipeline_mode<synchronous>, transform_indices = @transform_4, window_bounds = array<i64: 1, 2>}, {pipeline_mode = #tpu.pipeline_mode<synchronous>, transform_indices = @transform_5, window_bounds = array<i64: 2, 2>}, {pipeline_mode = #tpu.pipeline_mode<synchronous>, transform_indices = @transform_6, window_bounds = array<i64: 1, 2>}, {transform_indices = @transform_7, window_bounds = array<i64: 1, 16, 16, 4>}]} {
    %c0 = arith.constant 0 : index
    %c0_0 = arith.constant 0 : index
    %c0_1 = arith.constant 0 : index
    %c0_2 = arith.constant 0 : index
    %0 = vector.load %arg1[%c0, %c0_0, %c0_1, %c0_2] : memref<1x16x16x4xf32, #tpu.memory_space<vmem>>, vector<1x16x16x4xf32>
    %1 = vector.extract_strided_slice %0 {offsets = [0, 0, 0, 0], sizes = [1, 16, 16, 2], strides = [1, 1, 1, 1]} : vector<1x16x16x4xf32> to vector<1x16x16x2xf32>
    %2 = vector.extract_strided_slice %0 {offsets = [0, 0, 0, 2], sizes = [1, 16, 16, 2], strides = [1, 1, 1, 1]} : vector<1x16x16x4xf32> to vector<1x16x16x2xf32>
    %3 = vector.shape_cast %2 : vector<1x16x16x2xf32> to vector<256x2xf32>
    %c0_3 = arith.constant 0 : index
    %c0_4 = arith.constant 0 : index
    %4 = vector.load %arg2[%c0_3, %c0_4] : memref<2x2xf32, #tpu.memory_space<vmem>>, vector<2x2xf32>
    %cst = arith.constant dense<0.000000e+00> : vector<256x2xf32>
    %5 = tpu.matmul %3, %4, %cst {dimension_numbers = #tpu.dot_dimension_numbers<[1], [0], [0], [1], [0, 0, 1, 1], [], []>} : vector<256x2xf32>, vector<2x2xf32>, vector<256x2xf32> -> vector<256x2xf32>
    %c0_5 = arith.constant 0 : index
    %c0_6 = arith.constant 0 : index
    %6 = vector.load %arg3[%c0_5, %c0_6] : memref<1x2xf32, #tpu.memory_space<vmem>>, vector<1x2xf32>
    %7 = vector.broadcast %6 : vector<1x2xf32> to vector<256x2xf32>
    %8 = arith.addf %5, %7 : vector<256x2xf32>
    %cst_7 = arith.constant 0.000000e+00 : f32
    %9 = vector.broadcast %cst_7 : f32 to vector<256x2xf32>
    %10 = arith.maximumf %8, %9 : vector<256x2xf32>
    %11 = vector.shape_cast %10 : vector<256x2xf32> to vector<1x16x16x2xf32>
    %cst_8 = arith.constant 0.000000e+00 : f32
    %12 = vector.broadcast %cst_8 : f32 to vector<1x1x18x2xf32>
    %c0_9 = arith.constant 0 : index
    %c0_10 = arith.constant 0 : index
    %c0_11 = arith.constant 0 : index
    %c0_12 = arith.constant 0 : index
    %13 = vector.load %arg9[%c0_9, %c0_10, %c0_11, %c0_12] : memref<1x18x18x2xf32, #tpu.memory_space<vmem>>, vector<1x1x18x2xf32>
    tpu.vector_store %arg9[%c0_9, %c0_10, %c0_11, %c0_12], %12 {strides = array<i32>} : memref<1x18x18x2xf32, #tpu.memory_space<vmem>>, vector<1x1x18x2xf32>,
    %cst_13 = arith.constant 0.000000e+00 : f32
    %14 = vector.broadcast %cst_13 : f32 to vector<1x1x18x2xf32>
    %c0_14 = arith.constant 0 : index
    %c17 = arith.constant 17 : index
    %c0_15 = arith.constant 0 : index
    %c0_16 = arith.constant 0 : index
    %15 = vector.load %arg9[%c0_14, %c17, %c0_15, %c0_16] : memref<1x18x18x2xf32, #tpu.memory_space<vmem>>, vector<1x1x18x2xf32>
    tpu.vector_store %arg9[%c0_14, %c17, %c0_15, %c0_16], %14 {strides = array<i32>} : memref<1x18x18x2xf32, #tpu.memory_space<vmem>>, vector<1x1x18x2xf32>,
    %cst_17 = arith.constant 0.000000e+00 : f32
    %16 = vector.broadcast %cst_17 : f32 to vector<1x16x1x2xf32>
    %c0_18 = arith.constant 0 : index
    %c1 = arith.constant 1 : index
    %c0_19 = arith.constant 0 : index
    %c0_20 = arith.constant 0 : index
    %17 = vector.load %arg9[%c0_18, %c1, %c0_19, %c0_20] : memref<1x18x18x2xf32, #tpu.memory_space<vmem>>, vector<1x16x1x2xf32>
    tpu.vector_store %arg9[%c0_18, %c1, %c0_19, %c0_20], %16 {strides = array<i32>} : memref<1x18x18x2xf32, #tpu.memory_space<vmem>>, vector<1x16x1x2xf32>,
    %cst_21 = arith.constant 0.000000e+00 : f32
    %18 = vector.broadcast %cst_21 : f32 to vector<1x16x1x2xf32>
    %c0_22 = arith.constant 0 : index
    %c1_23 = arith.constant 1 : index
    %c17_24 = arith.constant 17 : index
    %c0_25 = arith.constant 0 : index
    %19 = vector.load %arg9[%c0_22, %c1_23, %c17_24, %c0_25] : memref<1x18x18x2xf32, #tpu.memory_space<vmem>>, vector<1x16x1x2xf32>
    tpu.vector_store %arg9[%c0_22, %c1_23, %c17_24, %c0_25], %18 {strides = array<i32>} : memref<1x18x18x2xf32, #tpu.memory_space<vmem>>, vector<1x16x1x2xf32>,
    %c0_26 = arith.constant 0 : index
    %c1_27 = arith.constant 1 : index
    %c1_28 = arith.constant 1 : index
    %c0_29 = arith.constant 0 : index
    %20 = vector.load %arg9[%c0_26, %c1_27, %c1_28, %c0_29] : memref<1x18x18x2xf32, #tpu.memory_space<vmem>>, vector<1x16x16x2xf32>
    tpu.vector_store %arg9[%c0_26, %c1_27, %c1_28, %c0_29], %11 {strides = array<i32>} : memref<1x18x18x2xf32, #tpu.memory_space<vmem>>, vector<1x16x16x2xf32>,
    %c0_30 = arith.constant 0 : index
    %c0_31 = arith.constant 0 : index
    %21 = vector.load %arg4[%c0_30, %c0_31] : memref<9x2xf32, #tpu.memory_space<vmem>>, vector<9x2xf32>
    %c0_32 = arith.constant 0 : index
    %c0_33 = arith.constant 0 : index
    %22 = vector.load %arg5[%c0_32, %c0_33] : memref<1x2xf32, #tpu.memory_space<vmem>>, vector<1x2xf32>
    %23 = vector.shape_cast %22 : vector<1x2xf32> to vector<2xf32>
    %cst_34 = arith.constant 0.000000e+00 : f32
    %24 = vector.broadcast %cst_34 : f32 to vector<1x8x16x2xf32>
    %c0_35 = arith.constant 0 : index
    %c0_36 = arith.constant 0 : index
    %c0_37 = arith.constant 0 : index
    %c0_38 = arith.constant 0 : index
    %25 = vector.load %arg9[%c0_35, %c0_36, %c0_37, %c0_38] : memref<1x18x18x2xf32, #tpu.memory_space<vmem>>, vector<1x8x16x2xf32>
    %26 = vector.extract_strided_slice %21 {offsets = [0, 0], sizes = [1, 2], strides = [1, 1]} : vector<9x2xf32> to vector<1x2xf32>
    %27 = vector.shape_cast %26 : vector<1x2xf32> to vector<2xf32>
    %28 = vector.shape_cast %27 : vector<2xf32> to vector<1x1x1x2xf32>
    %29 = vector.broadcast %28 : vector<1x1x1x2xf32> to vector<1x8x16x2xf32>
    %30 = arith.mulf %25, %29 : vector<1x8x16x2xf32>
    %31 = arith.addf %24, %30 : vector<1x8x16x2xf32>
    %c0_39 = arith.constant 0 : index
    %c0_40 = arith.constant 0 : index
    %c1_41 = arith.constant 1 : index
    %c0_42 = arith.constant 0 : index
    %32 = vector.load %arg9[%c0_39, %c0_40, %c1_41, %c0_42] : memref<1x18x18x2xf32, #tpu.memory_space<vmem>>, vector<1x8x16x2xf32>
    %33 = vector.extract_strided_slice %21 {offsets = [1, 0], sizes = [1, 2], strides = [1, 1]} : vector<9x2xf32> to vector<1x2xf32>
    %34 = vector.shape_cast %33 : vector<1x2xf32> to vector<2xf32>
    %35 = vector.shape_cast %34 : vector<2xf32> to vector<1x1x1x2xf32>
    %36 = vector.broadcast %35 : vector<1x1x1x2xf32> to vector<1x8x16x2xf32>
    %37 = arith.mulf %32, %36 : vector<1x8x16x2xf32>
    %38 = arith.addf %31, %37 : vector<1x8x16x2xf32>
    %c0_43 = arith.constant 0 : index
    %c0_44 = arith.constant 0 : index
    %c2 = arith.constant 2 : index
    %c0_45 = arith.constant 0 : index
    %39 = vector.load %arg9[%c0_43, %c0_44, %c2, %c0_45] : memref<1x18x18x2xf32, #tpu.memory_space<vmem>>, vector<1x8x16x2xf32>
    %40 = vector.extract_strided_slice %21 {offsets = [2, 0], sizes = [1, 2], strides = [1, 1]} : vector<9x2xf32> to vector<1x2xf32>
    %41 = vector.shape_cast %40 : vector<1x2xf32> to vector<2xf32>
    %42 = vector.shape_cast %41 : vector<2xf32> to vector<1x1x1x2xf32>
    %43 = vector.broadcast %42 : vector<1x1x1x2xf32> to vector<1x8x16x2xf32>
    %44 = arith.mulf %39, %43 : vector<1x8x16x2xf32>
    %45 = arith.addf %38, %44 : vector<1x8x16x2xf32>
    %c0_46 = arith.constant 0 : index
    %c1_47 = arith.constant 1 : index
    %c0_48 = arith.constant 0 : index
    %c0_49 = arith.constant 0 : index
    %46 = vector.load %arg9[%c0_46, %c1_47, %c0_48, %c0_49] : memref<1x18x18x2xf32, #tpu.memory_space<vmem>>, vector<1x8x16x2xf32>
    %47 = vector.extract_strided_slice %21 {offsets = [3, 0], sizes = [1, 2], strides = [1, 1]} : vector<9x2xf32> to vector<1x2xf32>
    %48 = vector.shape_cast %47 : vector<1x2xf32> to vector<2xf32>
    %49 = vector.shape_cast %48 : vector<2xf32> to vector<1x1x1x2xf32>
    %50 = vector.broadcast %49 : vector<1x1x1x2xf32> to vector<1x8x16x2xf32>
    %51 = arith.mulf %46, %50 : vector<1x8x16x2xf32>
    %52 = arith.addf %45, %51 : vector<1x8x16x2xf32>
    %c0_50 = arith.constant 0 : index
    %c1_51 = arith.constant 1 : index
    %c1_52 = arith.constant 1 : index
    %c0_53 = arith.constant 0 : index
    %53 = vector.load %arg9[%c0_50, %c1_51, %c1_52, %c0_53] : memref<1x18x18x2xf32, #tpu.memory_space<vmem>>, vector<1x8x16x2xf32>
    %54 = vector.extract_strided_slice %21 {offsets = [4, 0], sizes = [1, 2], strides = [1, 1]} : vector<9x2xf32> to vector<1x2xf32>
    %55 = vector.shape_cast %54 : vector<1x2xf32> to vector<2xf32>
    %56 = vector.shape_cast %55 : vector<2xf32> to vector<1x1x1x2xf32>
    %57 = vector.broadcast %56 : vector<1x1x1x2xf32> to vector<1x8x16x2xf32>
    %58 = arith.mulf %53, %57 : vector<1x8x16x2xf32>
    %59 = arith.addf %52, %58 : vector<1x8x16x2xf32>
    %c0_54 = arith.constant 0 : index
    %c1_55 = arith.constant 1 : index
    %c2_56 = arith.constant 2 : index
    %c0_57 = arith.constant 0 : index
    %60 = vector.load %arg9[%c0_54, %c1_55, %c2_56, %c0_57] : memref<1x18x18x2xf32, #tpu.memory_space<vmem>>, vector<1x8x16x2xf32>
    %61 = vector.extract_strided_slice %21 {offsets = [5, 0], sizes = [1, 2], strides = [1, 1]} : vector<9x2xf32> to vector<1x2xf32>
    %62 = vector.shape_cast %61 : vector<1x2xf32> to vector<2xf32>
    %63 = vector.shape_cast %62 : vector<2xf32> to vector<1x1x1x2xf32>
    %64 = vector.broadcast %63 : vector<1x1x1x2xf32> to vector<1x8x16x2xf32>
    %65 = arith.mulf %60, %64 : vector<1x8x16x2xf32>
    %66 = arith.addf %59, %65 : vector<1x8x16x2xf32>
    %c0_58 = arith.constant 0 : index
    %c2_59 = arith.constant 2 : index
    %c0_60 = arith.constant 0 : index
    %c0_61 = arith.constant 0 : index
    %67 = vector.load %arg9[%c0_58, %c2_59, %c0_60, %c0_61] : memref<1x18x18x2xf32, #tpu.memory_space<vmem>>, vector<1x8x16x2xf32>
    %68 = vector.extract_strided_slice %21 {offsets = [6, 0], sizes = [1, 2], strides = [1, 1]} : vector<9x2xf32> to vector<1x2xf32>
    %69 = vector.shape_cast %68 : vector<1x2xf32> to vector<2xf32>
    %70 = vector.shape_cast %69 : vector<2xf32> to vector<1x1x1x2xf32>
    %71 = vector.broadcast %70 : vector<1x1x1x2xf32> to vector<1x8x16x2xf32>
    %72 = arith.mulf %67, %71 : vector<1x8x16x2xf32>
    %73 = arith.addf %66, %72 : vector<1x8x16x2xf32>
    %c0_62 = arith.constant 0 : index
    %c2_63 = arith.constant 2 : index
    %c1_64 = arith.constant 1 : index
    %c0_65 = arith.constant 0 : index
    %74 = vector.load %arg9[%c0_62, %c2_63, %c1_64, %c0_65] : memref<1x18x18x2xf32, #tpu.memory_space<vmem>>, vector<1x8x16x2xf32>
    %75 = vector.extract_strided_slice %21 {offsets = [7, 0], sizes = [1, 2], strides = [1, 1]} : vector<9x2xf32> to vector<1x2xf32>
    %76 = vector.shape_cast %75 : vector<1x2xf32> to vector<2xf32>
    %77 = vector.shape_cast %76 : vector<2xf32> to vector<1x1x1x2xf32>
    %78 = vector.broadcast %77 : vector<1x1x1x2xf32> to vector<1x8x16x2xf32>
    %79 = arith.mulf %74, %78 : vector<1x8x16x2xf32>
    %80 = arith.addf %73, %79 : vector<1x8x16x2xf32>
    %c0_66 = arith.constant 0 : index
    %c2_67 = arith.constant 2 : index
    %c2_68 = arith.constant 2 : index
    %c0_69 = arith.constant 0 : index
    %81 = vector.load %arg9[%c0_66, %c2_67, %c2_68, %c0_69] : memref<1x18x18x2xf32, #tpu.memory_space<vmem>>, vector<1x8x16x2xf32>
    %82 = vector.extract_strided_slice %21 {offsets = [8, 0], sizes = [1, 2], strides = [1, 1]} : vector<9x2xf32> to vector<1x2xf32>
    %83 = vector.shape_cast %82 : vector<1x2xf32> to vector<2xf32>
    %84 = vector.shape_cast %83 : vector<2xf32> to vector<1x1x1x2xf32>
    %85 = vector.broadcast %84 : vector<1x1x1x2xf32> to vector<1x8x16x2xf32>
    %86 = arith.mulf %81, %85 : vector<1x8x16x2xf32>
    %87 = arith.addf %80, %86 : vector<1x8x16x2xf32>
    %88 = vector.shape_cast %23 : vector<2xf32> to vector<1x1x1x2xf32>
    %89 = vector.broadcast %88 : vector<1x1x1x2xf32> to vector<1x8x16x2xf32>
    %90 = arith.addf %87, %89 : vector<1x8x16x2xf32>
    %cst_70 = arith.constant 0.000000e+00 : f32
    %91 = vector.broadcast %cst_70 : f32 to vector<1x8x16x2xf32>
    %c0_71 = arith.constant 0 : index
    %c8 = arith.constant 8 : index
    %c0_72 = arith.constant 0 : index
    %c0_73 = arith.constant 0 : index
    %92 = vector.load %arg9[%c0_71, %c8, %c0_72, %c0_73] : memref<1x18x18x2xf32, #tpu.memory_space<vmem>>, vector<1x8x16x2xf32>
    %93 = vector.extract_strided_slice %21 {offsets = [0, 0], sizes = [1, 2], strides = [1, 1]} : vector<9x2xf32> to vector<1x2xf32>
    %94 = vector.shape_cast %93 : vector<1x2xf32> to vector<2xf32>
    %95 = vector.shape_cast %94 : vector<2xf32> to vector<1x1x1x2xf32>
    %96 = vector.broadcast %95 : vector<1x1x1x2xf32> to vector<1x8x16x2xf32>
    %97 = arith.mulf %92, %96 : vector<1x8x16x2xf32>
    %98 = arith.addf %91, %97 : vector<1x8x16x2xf32>
    %c0_74 = arith.constant 0 : index
    %c8_75 = arith.constant 8 : index
    %c1_76 = arith.constant 1 : index
    %c0_77 = arith.constant 0 : index
    %99 = vector.load %arg9[%c0_74, %c8_75, %c1_76, %c0_77] : memref<1x18x18x2xf32, #tpu.memory_space<vmem>>, vector<1x8x16x2xf32>
    %100 = vector.extract_strided_slice %21 {offsets = [1, 0], sizes = [1, 2], strides = [1, 1]} : vector<9x2xf32> to vector<1x2xf32>
    %101 = vector.shape_cast %100 : vector<1x2xf32> to vector<2xf32>
    %102 = vector.shape_cast %101 : vector<2xf32> to vector<1x1x1x2xf32>
    %103 = vector.broadcast %102 : vector<1x1x1x2xf32> to vector<1x8x16x2xf32>
    %104 = arith.mulf %99, %103 : vector<1x8x16x2xf32>
    %105 = arith.addf %98, %104 : vector<1x8x16x2xf32>
    %c0_78 = arith.constant 0 : index
    %c8_79 = arith.constant 8 : index
    %c2_80 = arith.constant 2 : index
    %c0_81 = arith.constant 0 : index
    %106 = vector.load %arg9[%c0_78, %c8_79, %c2_80, %c0_81] : memref<1x18x18x2xf32, #tpu.memory_space<vmem>>, vector<1x8x16x2xf32>
    %107 = vector.extract_strided_slice %21 {offsets = [2, 0], sizes = [1, 2], strides = [1, 1]} : vector<9x2xf32> to vector<1x2xf32>
    %108 = vector.shape_cast %107 : vector<1x2xf32> to vector<2xf32>
    %109 = vector.shape_cast %108 : vector<2xf32> to vector<1x1x1x2xf32>
    %110 = vector.broadcast %109 : vector<1x1x1x2xf32> to vector<1x8x16x2xf32>
    %111 = arith.mulf %106, %110 : vector<1x8x16x2xf32>
    %112 = arith.addf %105, %111 : vector<1x8x16x2xf32>
    %c0_82 = arith.constant 0 : index
    %c9 = arith.constant 9 : index
    %c0_83 = arith.constant 0 : index
    %c0_84 = arith.constant 0 : index
    %113 = vector.load %arg9[%c0_82, %c9, %c0_83, %c0_84] : memref<1x18x18x2xf32, #tpu.memory_space<vmem>>, vector<1x8x16x2xf32>
    %114 = vector.extract_strided_slice %21 {offsets = [3, 0], sizes = [1, 2], strides = [1, 1]} : vector<9x2xf32> to vector<1x2xf32>
    %115 = vector.shape_cast %114 : vector<1x2xf32> to vector<2xf32>
    %116 = vector.shape_cast %115 : vector<2xf32> to vector<1x1x1x2xf32>
    %117 = vector.broadcast %116 : vector<1x1x1x2xf32> to vector<1x8x16x2xf32>
    %118 = arith.mulf %113, %117 : vector<1x8x16x2xf32>
    %119 = arith.addf %112, %118 : vector<1x8x16x2xf32>
    %c0_85 = arith.constant 0 : index
    %c9_86 = arith.constant 9 : index
    %c1_87 = arith.constant 1 : index
    %c0_88 = arith.constant 0 : index
    %120 = vector.load %arg9[%c0_85, %c9_86, %c1_87, %c0_88] : memref<1x18x18x2xf32, #tpu.memory_space<vmem>>, vector<1x8x16x2xf32>
    %121 = vector.extract_strided_slice %21 {offsets = [4, 0], sizes = [1, 2], strides = [1, 1]} : vector<9x2xf32> to vector<1x2xf32>
    %122 = vector.shape_cast %121 : vector<1x2xf32> to vector<2xf32>
    %123 = vector.shape_cast %122 : vector<2xf32> to vector<1x1x1x2xf32>
    %124 = vector.broadcast %123 : vector<1x1x1x2xf32> to vector<1x8x16x2xf32>
    %125 = arith.mulf %120, %124 : vector<1x8x16x2xf32>
    %126 = arith.addf %119, %125 : vector<1x8x16x2xf32>
    %c0_89 = arith.constant 0 : index
    %c9_90 = arith.constant 9 : index
    %c2_91 = arith.constant 2 : index
    %c0_92 = arith.constant 0 : index
    %127 = vector.load %arg9[%c0_89, %c9_90, %c2_91, %c0_92] : memref<1x18x18x2xf32, #tpu.memory_space<vmem>>, vector<1x8x16x2xf32>
    %128 = vector.extract_strided_slice %21 {offsets = [5, 0], sizes = [1, 2], strides = [1, 1]} : vector<9x2xf32> to vector<1x2xf32>
    %129 = vector.shape_cast %128 : vector<1x2xf32> to vector<2xf32>
    %130 = vector.shape_cast %129 : vector<2xf32> to vector<1x1x1x2xf32>
    %131 = vector.broadcast %130 : vector<1x1x1x2xf32> to vector<1x8x16x2xf32>
    %132 = arith.mulf %127, %131 : vector<1x8x16x2xf32>
    %133 = arith.addf %126, %132 : vector<1x8x16x2xf32>
    %c0_93 = arith.constant 0 : index
    %c10 = arith.constant 10 : index
    %c0_94 = arith.constant 0 : index
    %c0_95 = arith.constant 0 : index
    %134 = vector.load %arg9[%c0_93, %c10, %c0_94, %c0_95] : memref<1x18x18x2xf32, #tpu.memory_space<vmem>>, vector<1x8x16x2xf32>
    %135 = vector.extract_strided_slice %21 {offsets = [6, 0], sizes = [1, 2], strides = [1, 1]} : vector<9x2xf32> to vector<1x2xf32>
    %136 = vector.shape_cast %135 : vector<1x2xf32> to vector<2xf32>
    %137 = vector.shape_cast %136 : vector<2xf32> to vector<1x1x1x2xf32>
    %138 = vector.broadcast %137 : vector<1x1x1x2xf32> to vector<1x8x16x2xf32>
    %139 = arith.mulf %134, %138 : vector<1x8x16x2xf32>
    %140 = arith.addf %133, %139 : vector<1x8x16x2xf32>
    %c0_96 = arith.constant 0 : index
    %c10_97 = arith.constant 10 : index
    %c1_98 = arith.constant 1 : index
    %c0_99 = arith.constant 0 : index
    %141 = vector.load %arg9[%c0_96, %c10_97, %c1_98, %c0_99] : memref<1x18x18x2xf32, #tpu.memory_space<vmem>>, vector<1x8x16x2xf32>
    %142 = vector.extract_strided_slice %21 {offsets = [7, 0], sizes = [1, 2], strides = [1, 1]} : vector<9x2xf32> to vector<1x2xf32>
    %143 = vector.shape_cast %142 : vector<1x2xf32> to vector<2xf32>
    %144 = vector.shape_cast %143 : vector<2xf32> to vector<1x1x1x2xf32>
    %145 = vector.broadcast %144 : vector<1x1x1x2xf32> to vector<1x8x16x2xf32>
    %146 = arith.mulf %141, %145 : vector<1x8x16x2xf32>
    %147 = arith.addf %140, %146 : vector<1x8x16x2xf32>
    %c0_100 = arith.constant 0 : index
    %c10_101 = arith.constant 10 : index
    %c2_102 = arith.constant 2 : index
    %c0_103 = arith.constant 0 : index
    %148 = vector.load %arg9[%c0_100, %c10_101, %c2_102, %c0_103] : memref<1x18x18x2xf32, #tpu.memory_space<vmem>>, vector<1x8x16x2xf32>
    %149 = vector.extract_strided_slice %21 {offsets = [8, 0], sizes = [1, 2], strides = [1, 1]} : vector<9x2xf32> to vector<1x2xf32>
    %150 = vector.shape_cast %149 : vector<1x2xf32> to vector<2xf32>
    %151 = vector.shape_cast %150 : vector<2xf32> to vector<1x1x1x2xf32>
    %152 = vector.broadcast %151 : vector<1x1x1x2xf32> to vector<1x8x16x2xf32>
    %153 = arith.mulf %148, %152 : vector<1x8x16x2xf32>
    %154 = arith.addf %147, %153 : vector<1x8x16x2xf32>
    %155 = vector.shape_cast %23 : vector<2xf32> to vector<1x1x1x2xf32>
    %156 = vector.broadcast %155 : vector<1x1x1x2xf32> to vector<1x8x16x2xf32>
    %157 = arith.addf %154, %156 : vector<1x8x16x2xf32>
    %158 = tpu.concatenate %90, %157 in 1 : vector<1x8x16x2xf32>, vector<1x8x16x2xf32> -> vector<1x16x16x2xf32>
    %159 = vector.shape_cast %158 : vector<1x16x16x2xf32> to vector<256x2xf32>
    %c0_104 = arith.constant 0 : index
    %c0_105 = arith.constant 0 : index
    %160 = vector.load %arg6[%c0_104, %c0_105] : memref<2x2xf32, #tpu.memory_space<vmem>>, vector<2x2xf32>
    %cst_106 = arith.constant dense<0.000000e+00> : vector<256x2xf32>
    %161 = tpu.matmul %159, %160, %cst_106 {dimension_numbers = #tpu.dot_dimension_numbers<[1], [0], [0], [1], [0, 0, 1, 1], [], []>} : vector<256x2xf32>, vector<2x2xf32>, vector<256x2xf32> -> vector<256x2xf32>
    %c0_107 = arith.constant 0 : index
    %c0_108 = arith.constant 0 : index
    %162 = vector.load %arg7[%c0_107, %c0_108] : memref<1x2xf32, #tpu.memory_space<vmem>>, vector<1x2xf32>
    %163 = vector.broadcast %162 : vector<1x2xf32> to vector<256x2xf32>
    %164 = arith.addf %161, %163 : vector<256x2xf32>
    %cst_109 = arith.constant 0.000000e+00 : f32
    %165 = vector.broadcast %cst_109 : f32 to vector<256x2xf32>
    %166 = arith.maximumf %164, %165 : vector<256x2xf32>
    %167 = vector.shape_cast %166 : vector<256x2xf32> to vector<1x16x16x2xf32>
    %168 = tpu.concatenate %1, %167 in 3 : vector<1x16x16x2xf32>, vector<1x16x16x2xf32> -> vector<1x16x16x4xf32>
    %c0_110 = arith.constant 0 : index
    %c0_111 = arith.constant 0 : index
    %c0_112 = arith.constant 0 : index
    %c0_113 = arith.constant 0 : index
    %169 = vector.load %arg8[%c0_110, %c0_111, %c0_112, %c0_113] : memref<1x16x16x4xf32, #tpu.memory_space<vmem>>, vector<1x16x16x4xf32>
    tpu.vector_store %arg8[%c0_110, %c0_111, %c0_112, %c0_113], %168 {strides = array<i32>} : memref<1x16x16x4xf32, #tpu.memory_space<vmem>>, vector<1x16x16x4xf32>,
    return
  }
  func.func @transform_0(%arg0: i32) -> (i32, i32, i32, i32) {
    %c0_i32 = arith.constant 0 : i32
    %c0_i32_0 = arith.constant 0 : i32
    %c0_i32_1 = arith.constant 0 : i32
    %c0_i32_2 = arith.constant 0 : i32
    return %arg0, %c0_i32, %c0_i32_0, %c0_i32_1 : i32, i32, i32, i32
  }
  func.func @transform_1(%arg0: i32) -> (i32, i32) {
    %c0_i32 = arith.constant 0 : i32
    %c0_i32_0 = arith.constant 0 : i32
    %c0_i32_1 = arith.constant 0 : i32
    return %c0_i32, %c0_i32_0 : i32, i32
  }
  func.func @transform_2(%arg0: i32) -> (i32, i32) {
    %c0_i32 = arith.constant 0 : i32
    %c0_i32_0 = arith.constant 0 : i32
    %c0_i32_1 = arith.constant 0 : i32
    return %c0_i32, %c0_i32_0 : i32, i32
  }
  func.func @transform_3(%arg0: i32) -> (i32, i32) {
    %c0_i32 = arith.constant 0 : i32
    %c0_i32_0 = arith.constant 0 : i32
    %c0_i32_1 = arith.constant 0 : i32
    return %c0_i32, %c0_i32_0 : i32, i32
  }
  func.func @transform_4(%arg0: i32) -> (i32, i32) {
    %c0_i32 = arith.constant 0 : i32
    %c0_i32_0 = arith.constant 0 : i32
    %c0_i32_1 = arith.constant 0 : i32
    return %c0_i32, %c0_i32_0 : i32, i32
  }
  func.func @transform_5(%arg0: i32) -> (i32, i32) {
    %c0_i32 = arith.constant 0 : i32
    %c0_i32_0 = arith.constant 0 : i32
    %c0_i32_1 = arith.constant 0 : i32
    return %c0_i32, %c0_i32_0 : i32, i32
  }
  func.func @transform_6(%arg0: i32) -> (i32, i32) {
    %c0_i32 = arith.constant 0 : i32
    %c0_i32_0 = arith.constant 0 : i32
    %c0_i32_1 = arith.constant 0 : i32
    return %c0_i32, %c0_i32_0 : i32, i32
  }
  func.func @transform_7(%arg0: i32) -> (i32, i32, i32, i32) {
    %c0_i32 = arith.constant 0 : i32
    %c0_i32_0 = arith.constant 0 : i32
    %c0_i32_1 = arith.constant 0 : i32
    %c0_i32_2 = arith.constant 0 : i32
    return %arg0, %c0_i32, %c0_i32_0, %c0_i32_1 : i32, i32, i32, i32
  }
}

</mosaic_0001>

<bundles_post_ra>
// kernel: tpu_custom_call.1
= control target key start
LH: loop header
LB: loop body
LE: loop exit
PB: predicated region body
PF: predicated region fallthrough
CT: control target
= control target key end

     0   :  { %s2717_s24 = smov 0   ;;  %s3837_s0 = inlined_call_operand.vmem [shape: f32[2,16,16,4], index: 0, kind: input, shape index: {}]   ;;  %s3838_s1 = inlined_call_operand.vmem [shape: f32[2,2], index: 1, kind: input, shape index: {}]   ;;  %s3839_s2 = inlined_call_operand.vmem [shape: f32[1,2], index: 2, kind: input, shape index: {}]   ;;  %s3840_s3 = inlined_call_operand.vmem [shape: f32[9,2], index: 3, kind: input, shape index: {}]   ;;  %s3841_s4 = inlined_call_operand.vmem [shape: f32[1,2], index: 4, kind: input, shape index: {}]   ;;  %s3842_s5 = inlined_call_operand.vmem [shape: f32[2,2], index: 5, kind: input, shape index: {}]   ;;  %s3843_s6 = inlined_call_operand.vmem [shape: f32[1,2], index: 6, kind: input, shape index: {}]   ;;  %s3844_s7 = inlined_call_operand.vmem [shape: f32[2,16,16,4], index: 7, kind: output, shape index: {}]  }
   0x1 LB: > { %s2372_s25 = sadd.s32 4294967295, %s2672_s24   ;;  %p2376_p0 = scmp.ge.s32.totalorder %s2672_s24, 1  ;;  %s2672_s24 = sphi %s2717_s24, %s17_s24  }
   0x2   : > { %p237_p1 = scmp.lt.s32.totalorder %s2672_s24, 3 }
   0x4   : > { %p238_p2 = pnand %p2376_p0, %p237_p1 }
   0x5   : > { %p269_p3 = scmp.lt.s32.totalorder (!%p238_p2), %s2372_s25, 1  ;;  %v311_v0 = vld [vmem:[%s3838_s1] sm:$0x3] (!%p238_p2)  ;;  %vm480_vm0 = vcmask (!%p238_p2), 1041408   ;;  %s2674_s9 = smov (!%p238_p2), 126   ;;  %vm415_vm1 = vcmask (!%p238_p2), 15360  }
   0x6   : > { %241 = sbr.rel (%p238_p2) target bundleno = 860 (0x35c), region = 48  ;;  %2521 = vmatprep.subr.msk.mxu0 (!%p238_p2), %vm480_vm0, %v311_v0  ;;  %vm743_vm2 = vcmask (!%p238_p2), 9216   ;;  %vm750_vm3 = vcmask (!%p238_p2), 8192   ;;  %s2676_s29 = smov (!%p238_p2), 2   ;;  %vm2284_vm4 = vcmask (!%p238_p2), 31744  }
   0x7   : > { %2522 = vmatpush3.msk.msra.mxu0 (!%p238_p2), %vm480_vm0, %v311_v0 }
   0xd   : > { %s3846_s25 = smov (!%p269_p3, %s2372_s25), 1 }
   0xe   : > { %s2453_s28 = sshll.u32 %s3846_s25, 8 }
   0xf   : > { %s2738_s8 = scalar_lea.vmem %s3837_s0, %s2453_s28  ;;  %s3687_s10 = scalar_lea.vmem %s3844_s7, %s2453_s28 }
  0x10   : > { %v279_v1 = vld [vmem:[%s2738_s8] sm:$0xff]  ;;  %v281_v2 = vld [vmem:[%s2738_s8 + $0x10] sm:$0xff]  ;;  %v280_v3 = vld [vmem:[%s2738_s8 + $0x8] sm:$0xff] }
  0x11   : > { %351 = vrot.lane.b32.xlu0 %v279_v1, %s2674_s9  ;;  %355 = vrot.lane.b32.xlu1 %v281_v2, %s2674_s9  ;;  %v282_v4 = vld [vmem:[%s2738_s8 + $0x18] sm:$0xff]  ;;  %v283_v5 = vld [vmem:[%s2738_s8 + $0x20] sm:$0xff]  ;;  %v2675_v1 = vmov 0.0  }
  0x12   : > { %v284_v6 = vld [vmem:[%s2738_s8 + $0x28] sm:$0xff]  ;;  %v285_v7 = vld [vmem:[%s2738_s8 + $0x30] sm:$0xff]  ;;  %v286_v8 = vld [vmem:[%s2738_s8 + $0x38] sm:$0xff]  ;;  %741 = vst.msk [vmem:[#allocation2] sm:$0xff] %vm415_vm1, %v2675_v1 }
  0x13   : > { %v287_v9 = vld [vmem:[%s2738_s8 + $0x40] sm:$0xff]  ;;  %v288_v10 = vld [vmem:[%s2738_s8 + $0x48] sm:$0xff]  ;;  %v289_v11 = vld [vmem:[%s2738_s8 + $0x50] sm:$0xff]  ;;  %742 = vst.msk [vmem:[#allocation2 + $0x8] sm:$0xff] %vm415_vm1, %v2675_v1 }
  0x14   : > { %v290_v12 = vld [vmem:[%s2738_s8 + $0x58] sm:$0xff]  ;;  %v291_v13 = vld [vmem:[%s2738_s8 + $0x60] sm:$0xff]  ;;  %v292_v14 = vld [vmem:[%s2738_s8 + $0x68] sm:$0xff]  ;;  %746 = vst.msk [vmem:[#allocation2 + $0x198] sm:$0xff] %vm415_vm1, %v2675_v1 }
  0x15   : > { %353 = vrot.lane.b32.xlu0 %v280_v3, %s2674_s9  ;;  %357 = vrot.lane.b32.xlu1 %v282_v4, %s2674_s9  ;;  %v293_v15 = vld [vmem:[%s2738_s8 + $0x70] sm:$0xff]  ;;  %v294_v16 = vld [vmem:[%s2738_s8 + $0x78] sm:$0xff]  ;;  %747 = vst.msk [vmem:[#allocation2 + $0x1a0] sm:$0xff] %vm415_vm1, %v2675_v1  ;;  %v834_v3 = vlaneseq }
  0x16   : > { %v295_v17 = vld [vmem:[%s2738_s8 + $0x80] sm:$0xff]  ;;  %v296_v18 = vld [vmem:[%s2738_s8 + $0x88] sm:$0xff]  ;;  %v297_v19 = vld [vmem:[%s2738_s8 + $0x90] sm:$0xff]  ;;  %744 = vst.msk [vmem:[#allocation2 + $0x10] sm:$0x3] %vm743_vm2, %v2675_v1 }
  0x17   : > { %v298_v20 = vld [vmem:[%s2738_s8 + $0x98] sm:$0xff]  ;;  %v299_v21 = vld [vmem:[%s2738_s8 + $0xa0] sm:$0xff]  ;;  %v300_v22 = vld [vmem:[%s2738_s8 + $0xa8] sm:$0xff]  ;;  %748 = vst.msk [vmem:[#allocation2 + $0x1a8] sm:$0x3] %vm743_vm2, %v2675_v1  ;;  %v2877_v4 = vshrl.u32 %v834_v3, 7 }
  0x18   : > { %v301_v23 = vld [vmem:[%s2738_s8 + $0xb0] sm:$0xff]  ;;  %v302_v24 = vld [vmem:[%s2738_s8 + $0xb8] sm:$0xff]  ;;  %v303_v25 = vld [vmem:[%s2738_s8 + $0xc0] sm:$0xff]  ;;  %751 = vst.msk [vmem:[#allocation2 + $0x18] sm:$0x1] %vm750_vm3, %v2675_v1 }
  0x19   : > { %359 = vrot.lane.b32.xlu0 %v283_v5, %s2674_s9  ;;  %361 = vrot.lane.b32.xlu1 %v284_v6, %s2674_s9  ;;  %v304_v26 = vld [vmem:[%s2738_s8 + $0xc8] sm:$0xff]  ;;  %v305_v27 = vld [vmem:[%s2738_s8 + $0xd0] sm:$0xff]  ;;  %752 = vst.msk [vmem:[#allocation2 + $0x30] sm:$0x1] %vm750_vm3, %v2675_v1  ;;  %753 = vst.msk [vmem:[#allocation2 + $0x48] sm:$0x1] %vm750_vm3, %v2675_v1 }
  0x1a   : > { %v306_v28 = vld [vmem:[%s2738_s8 + $0xd8] sm:$0xff]  ;;  %v307_v29 = vld [vmem:[%s2738_s8 + $0xe0] sm:$0xff]  ;;  %v308_v30 = vld [vmem:[%s2738_s8 + $0xe8] sm:$0xff]  ;;  %754 = vst.msk [vmem:[#allocation2 + $0x60] sm:$0x1] %vm750_vm3, %v2675_v1  ;;  %v836_v5 = vsub.s32 0, %v2877_v4 }
  0x1b   : > { %v309_v31 = vld [vmem:[%s2738_s8 + $0xf0] sm:$0xff]  ;;  %v310_v32 = vld [vmem:[%s2738_s8 + $0xf8] sm:$0xff]  ;;  %755 = vst.msk [vmem:[#allocation2 + $0x78] sm:$0x1] %vm750_vm3, %v2675_v1  ;;  %756 = vst.msk [vmem:[#allocation2 + $0x90] sm:$0x1] %vm750_vm3, %v2675_v1 }
  0x1c   : > { %757 = vst.msk [vmem:[#allocation2 + $0xa8] sm:$0x1] %vm750_vm3, %v2675_v1  ;;  %758 = vst.msk [vmem:[#allocation2 + $0xc0] sm:$0x1] %vm750_vm3, %v2675_v1  ;;  %v1760_v2 = vld [vmem:[%s3842_s5] sm:$0x3] }
  0x1d   : > { %363 = vrot.lane.b32.xlu0 %v285_v7, %s2674_s9  ;;  %365 = vrot.lane.b32.xlu1 %v286_v8, %s2674_s9  ;;  %759 = vst.msk [vmem:[#allocation2 + $0xd8] sm:$0x1] %vm750_vm3, %v2675_v1  ;;  %760 = vst.msk [vmem:[#allocation2 + $0xf0] sm:$0x1] %vm750_vm3, %v2675_v1  ;;  %v888_v6 = vsub.s32 1, %v2877_v4  ;;  %v2884_v7 = vld [vmem:[%s3840_s3] sm:$0xff] }
  0x1e   : > { %761 = vst.msk [vmem:[#allocation2 + $0x108] sm:$0x1] %vm750_vm3, %v2675_v1  ;;  %762 = vst.msk [vmem:[#allocation2 + $0x120] sm:$0x1] %vm750_vm3, %v2675_v1  ;;  %2571 = vmatprep.subr.msk.mxu1 %vm480_vm0, %v1760_v2  ;;  %v2889_v8 = vld [vmem:[%s3839_s2] ss:$0 sm:$0xff] }
  0x1f   : > { %763 = vst.msk [vmem:[#allocation2 + $0x138] sm:$0x1] %vm750_vm3, %v2675_v1  ;;  %764 = vst.msk [vmem:[#allocation2 + $0x150] sm:$0x1] %vm750_vm3, %v2675_v1  ;;  %2572 = vmatpush3.msk.msra.mxu1 %vm480_vm0, %v1760_v2 }
  0x20   : > { %765 = vst.msk [vmem:[#allocation2 + $0x168] sm:$0x1] %vm750_vm3, %v2675_v1  ;;  %766 = vst.msk [vmem:[#allocation2 + $0x180] sm:$0x1] %vm750_vm3, %v2675_v1 }
  0x21   : > { %367 = vrot.lane.b32.xlu0 %v287_v9, %s2674_s9  ;;  %369 = vrot.lane.b32.xlu1 %v288_v10, %s2674_s9  ;;  %767 = vst.msk [vmem:[#allocation2 + $0x29] sm:$0x1] %vm750_vm3, %v2675_v1  ;;  %768 = vst.msk [vmem:[#allocation2 + $0x41] sm:$0x1] %vm750_vm3, %v2675_v1  ;;  %v2892_v10 = vrot.slane %v2884_v7, %v836_v5 }
  0x22   : > { %769 = vst.msk [vmem:[#allocation2 + $0x59] sm:$0x1] %vm750_vm3, %v2675_v1  ;;  %770 = vst.msk [vmem:[#allocation2 + $0x71] sm:$0x1] %vm750_vm3, %v2675_v1 }
  0x23   : > { %771 = vst.msk [vmem:[#allocation2 + $0x89] sm:$0x1] %vm750_vm3, %v2675_v1  ;;  %772 = vst.msk [vmem:[#allocation2 + $0xa1] sm:$0x1] %vm750_vm3, %v2675_v1 }
  0x24   : > { %773 = vst.msk [vmem:[#allocation2 + $0xb9] sm:$0x1] %vm750_vm3, %v2675_v1  ;;  %774 = vst.msk [vmem:[#allocation2 + $0xd1] sm:$0x1] %vm750_vm3, %v2675_v1 }
  0x25   : > { %371 = vrot.lane.b32.xlu0 %v289_v11, %s2674_s9  ;;  %373 = vrot.lane.b32.xlu1 %v290_v12, %s2674_s9  ;;  %775 = vst.msk [vmem:[#allocation2 + $0xe9] sm:$0x1] %vm750_vm3, %v2675_v1  ;;  %776 = vst.msk [vmem:[#allocation2 + $0x101] sm:$0x1] %vm750_vm3, %v2675_v1  ;;  %v2895_v11 = vrot.slane %v2884_v7, %v888_v6  ;;  %v940_v12 = vsub.s32 2, %v2877_v4 }
  0x26   : > { %777 = vst.msk [vmem:[#allocation2 + $0x119] sm:$0x1] %vm750_vm3, %v2675_v1  ;;  %778 = vst.msk [vmem:[#allocation2 + $0x131] sm:$0x1] %vm750_vm3, %v2675_v1 }
  0x27   : > { %779 = vst.msk [vmem:[#allocation2 + $0x149] sm:$0x1] %vm750_vm3, %v2675_v1  ;;  %780 = vst.msk [vmem:[#allocation2 + $0x161] sm:$0x1] %vm750_vm3, %v2675_v1 }
  0x28   : > { %781 = vst.msk [vmem:[#allocation2 + $0x179] sm:$0x1] %vm750_vm3, %v2675_v1  ;;  %782 = vst.msk [vmem:[#allocation2 + $0x191] sm:$0x1] %vm750_vm3, %v2675_v1 }
  0x29   : > { %375 = vrot.lane.b32.xlu0 %v291_v13, %s2674_s9  ;;  %377 = vrot.lane.b32.xlu1 %v292_v14, %s2674_s9 }
  0x2d   : > { %379 = vrot.lane.b32.xlu0 %v293_v15, %s2674_s9  ;;  %381 = vrot.lane.b32.xlu1 %v294_v16, %s2674_s9  ;;  %v818_v15 = vld [vmem:[#allocation2] sm:$0xff] }
  0x2e   : > { %v870_v16 = vld [vmem:[#allocation2 + $0x1] sm:$0xff] }
  0x31   : > { %383 = vrot.lane.b32.xlu0 %v295_v17, %s2674_s9  ;;  %385 = vrot.lane.b32.xlu1 %v296_v18, %s2674_s9  ;;  %v819_v18 = vld [vmem:[#allocation2 + $0x8] sm:$0xff] }
  0x35   : > { %387 = vrot.lane.b32.xlu0 %v297_v19, %s2674_s9  ;;  %389 = vrot.lane.b32.xlu1 %v298_v20, %s2674_s9  ;;  %v871_v19 = vld [vmem:[#allocation2 + $0x9] sm:$0xff] }
  0x39   : > { %391 = vrot.lane.b32.xlu0 %v299_v21, %s2674_s9  ;;  %393 = vrot.lane.b32.xlu1 %v300_v22, %s2674_s9 }
  0x3d   : > { %395 = vrot.lane.b32.xlu0 %v301_v23, %s2674_s9  ;;  %397 = vrot.lane.b32.xlu1 %v302_v24, %s2674_s9  ;;  %v838_v23 = vmul.f32 %v2892_v10, %v818_v15  ;;  %v890_v24 = vmul.f32 %v2895_v11, %v870_v16 }
  0x41   : > { %399 = vrot.lane.b32.xlu0 %v303_v25, %s2674_s9  ;;  %401 = vrot.lane.b32.xlu1 %v304_v26, %s2674_s9  ;;  %v2903_v25 = vrot.slane %v2884_v7, %v940_v12 }
  0x45   : > { %403 = vrot.lane.b32.xlu0 %v305_v27, %s2674_s9  ;;  %405 = vrot.lane.b32.xlu1 %v306_v28, %s2674_s9  ;;  %v922_v28 = vld [vmem:[#allocation2 + $0x2] sm:$0xff] }
  0x49   : > { %407 = vrot.lane.b32.xlu0 %v307_v29, %s2674_s9  ;;  %409 = vrot.lane.b32.xlu1 %v308_v30, %s2674_s9  ;;  %v839_v29 = vmul.f32 %v2892_v10, %v819_v18  ;;  %v891_v30 = vmul.f32 %v2895_v11, %v871_v19 }
  0x4d   : > { %411 = vrot.lane.b32.xlu0 %v309_v31, %s2674_s9  ;;  %413 = vrot.lane.b32.xlu1 %v310_v32, %s2674_s9  ;;  %v992_v32 = vsub.s32 3, %v2877_v4 }
  0x83   : > { %v352_v33 = vpop.permute.xlu0 %351  ;;  %v356_v34 = vpop.permute.xlu1 %355 }
  0x84   : > { %2523 = vmatprep.mubr.msk.f32.mxu0 %vm415_vm1, %v352_v33  ;;  %v1044_v33 = vsub.s32 4, %v2877_v4 }
  0x87   : > { %v354_v35 = vpop.permute.xlu0 %353  ;;  %v358_v36 = vpop.permute.xlu1 %357 }
  0x88   : > { %2524 = vmatmul.mubr.msk.f32.vlgmr.msra.gmra.mrb[0].mxu0 %vm415_vm1, %v354_v35 }
  0x89   : > { %2526 = vmatprep.mubr.msk.f32.mxu0 %vm415_vm1, %v356_v34  ;;  %v923_v34 = vld [vmem:[#allocation2 + $0xa] sm:$0xff] }
  0x8b   : > { %v360_v37 = vpop.permute.xlu0 %359  ;;  %v362_v38 = vpop.permute.xlu1 %361 }
  0x8c   : > { %2527 = vmatmul.mubr.msk.f32.gmra.mrb[2].mxu0 %vm415_vm1, %v358_v36  ;;  %v1096_v36 = vsub.s32 5, %v2877_v4 }
  0x8d   : > { %2529 = vmatprep.mubr.msk.f32.mxu0 %vm415_vm1, %v360_v37 }
  0x8f   : > { %v364_v39 = vpop.permute.xlu0 %363  ;;  %v366_v40 = vpop.permute.xlu1 %365 }
  0x90   : > { %2530 = vmatmul.mubr.msk.f32.gmra.mrb[4].mxu0 %vm415_vm1, %v362_v38 }
  0x91   : > { %2532 = vmatprep.mubr.msk.f32.mxu0 %vm415_vm1, %v364_v39  ;;  %v906_v39 = vadd.f32 %v890_v24, %v838_v23 }
  0x93   : > { %v368_v41 = vpop.permute.xlu0 %367  ;;  %v370_v42 = vpop.permute.xlu1 %369 }
  0x94   : > { %2533 = vmatmul.mubr.msk.f32.gmra.mrb[6].mxu0 %vm415_vm1, %v366_v40  ;;  %v942_v40 = vmul.f32 %v2903_v25, %v922_v28 }
  0x95   : > { %2535 = vmatprep.mubr.msk.f32.mxu0 %vm415_vm1, %v368_v41 }
  0x97   : > { %v372_v43 = vpop.permute.xlu0 %371  ;;  %v374_v44 = vpop.permute.xlu1 %373 }
  0x98   : > { %2536 = vmatmul.mubr.msk.f32.gmra.mrb[8].mxu0 %vm415_vm1, %v370_v42 }
  0x99   : > { %2538 = vmatprep.mubr.msk.f32.mxu0 %vm415_vm1, %v372_v43  ;;  %v1201_v43 = vsub.s32 7, %v2877_v4 }
  0x9b   : > { %v376_v45 = vpop.permute.xlu0 %375  ;;  %v378_v46 = vpop.permute.xlu1 %377 }
  0x9c   : > { %2539 = vmatmul.mubr.msk.f32.gmra.mrb[10].mxu0 %vm415_vm1, %v374_v44  ;;  %v907_v44 = vadd.f32 %v891_v30, %v839_v29 }
  0x9d   : > { %2541 = vmatprep.mubr.msk.f32.mxu0 %vm415_vm1, %v376_v45  ;;  %v943_v45 = vmul.f32 %v2903_v25, %v923_v34 }
  0x9f   : > { %v380_v47 = vpop.permute.xlu0 %379  ;;  %v382_v48 = vpop.permute.xlu1 %381 }
  0xa0   : > { %2542 = vmatmul.mubr.msk.f32.gmra.mrb[12].mxu0 %vm415_vm1, %v378_v46 }
  0xa1   : > { %2544 = vmatprep.mubr.msk.f32.mxu0 %vm415_vm1, %v380_v47  ;;  %v2922_v47 = vrot.slane %v2884_v7, %v992_v32 }
  0xa3   : > { %v384_v49 = vpop.permute.xlu0 %383  ;;  %v386_v50 = vpop.permute.xlu1 %385 }
  0xa4   : > { %2545 = vmatmul.mubr.msk.f32.gmra.mrb[14].mxu0 %vm415_vm1, %v382_v48  ;;  %v2925_v48 = vrot.slane %v2884_v7, %v1044_v33 }
  0xa5   : > { %2547 = vmatprep.mubr.msk.f32.mxu0 %vm415_vm1, %v384_v49  ;;  %v1149_v49 = vsub.s32 6, %v2877_v4 }
  0xa7   : > { %v388_v51 = vpop.permute.xlu0 %387  ;;  %v390_v52 = vpop.permute.xlu1 %389  ;;  %v2942_v2 = vrot.slane %v2884_v7, %v1149_v49 }
  0xa8   : > { %2548 = vmatmul.mubr.msk.f32.gmra.mrb[16].mxu0 %vm415_vm1, %v386_v50 }
  0xa9   : > { %2550 = vmatprep.mubr.msk.f32.mxu0 %vm415_vm1, %v388_v51  ;;  %v2929_v51 = vrot.slane %v2884_v7, %v1096_v36 }
  0xab   : > { %v392_v53 = vpop.permute.xlu0 %391  ;;  %v394_v54 = vpop.permute.xlu1 %393 }
  0xac   : > { %2551 = vmatmul.mubr.msk.f32.gmra.mrb[18].mxu0 %vm415_vm1, %v390_v52 }
  0xad   : > { %2553 = vmatprep.mubr.msk.f32.mxu0 %vm415_vm1, %v392_v53 }
  0xaf   : > { %v396_v55 = vpop.permute.xlu0 %395  ;;  %v398_v56 = vpop.permute.xlu1 %397 }
  0xb0   : > { %2554 = vmatmul.mubr.msk.f32.gmra.mrb[20].mxu0 %vm415_vm1, %v394_v54  ;;  %v958_v54 = vadd.f32 %v942_v40, %v906_v39 }
  0xb1   : > { %2556 = vmatprep.mubr.msk.f32.mxu0 %vm415_vm1, %v396_v55 }
  0xb3   : > { %v400_v57 = vpop.permute.xlu0 %399  ;;  %v402_v58 = vpop.permute.xlu1 %401 }
  0xb4   : > { %2557 = vmatmul.mubr.msk.f32.gmra.mrb[22].mxu0 %vm415_vm1, %v398_v56 }
  0xb5   : > { %2559 = vmatprep.mubr.msk.f32.mxu0 %vm415_vm1, %v400_v57 }
  0xb7   : > { %v404_v59 = vpop.permute.xlu0 %403  ;;  %v406_v60 = vpop.permute.xlu1 %405 }
  0xb8   : > { %2560 = vmatmul.mubr.msk.f32.gmra.mrb[24].mxu0 %vm415_vm1, %v402_v58 }
  0xb9   : > { %2562 = vmatprep.mubr.msk.f32.mxu0 %vm415_vm1, %v404_v59 }
  0xbb   : > { %v408_v61 = vpop.permute.xlu0 %407  ;;  %v410_v62 = vpop.permute.xlu1 %409 }
  0xbc   : > { %2563 = vmatmul.mubr.msk.f32.gmra.mrb[26].mxu0 %vm415_vm1, %v406_v60 }
  0xbd   : > { %2565 = vmatprep.mubr.msk.f32.mxu0 %vm415_vm1, %v408_v61  ;;  %v2936_v61 = vrot.slane %v2884_v7, %v1201_v43 }
  0xbf   : > { %v412_v63 = vpop.permute.xlu0 %411  ;;  %v414_v0 = vpop.permute.xlu1 %413 }
  0xc0   : > { %2566 = vmatmul.mubr.msk.f32.gmra.mrb[28].mxu0 %vm415_vm1, %v410_v62  ;;  %v959_v62 = vadd.f32 %v943_v45, %v907_v44 }
  0xc1   : > { %2568 = vmatprep.mubr.msk.f32.mxu0 %vm415_vm1, %v412_v63 }
  0xc4   : > { %2569 = vmatmul.mubr.msk.f32.gmra.mrb[30].mxu0 %vm415_vm1, %v414_v0 }
 0x15b   : > { %v2525_v9 = vpop.f32.mrb[0].mxu0 }
 0x15c   : > { %v556_v13 = vadd.f32 %v2525_v9, %v2889_v8  ;;  %v550_v14 = vpop.f32.mrb[1].mxu0 }
 0x15d   : > { %v551_v17 = vadd.f32 %v2889_v8, %v550_v14 }
 0x15e   : > { %v710_v20 = vmax.f32 %v556_v13, 0.0 }
 0x15f   : > { %v709_v21 = vmax.f32 %v551_v17, 0.0  ;;  %v2528_v22 = vpop.f32.mrb[2].mxu0 }
 0x160   : > { %784 = vst.msk [vmem:[#allocation2 + $0x21] sm:$0xff] %vm415_vm1, %v710_v20  ;;  %v566_v26 = vadd.f32 %v2528_v22, %v2889_v8  ;;  %v560_v27 = vpop.f32.mrb[3].mxu0 }
 0x161   : > { %783 = vst.msk [vmem:[#allocation2 + $0x19] sm:$0xff] %vm415_vm1, %v709_v21  ;;  %v561_v31 = vadd.f32 %v2889_v8, %v560_v27 }
 0x162   : > { %v712_v35 = vmax.f32 %v566_v26, 0.0  ;;  %v2964_v26 = vld [vmem:[%s3840_s3 + $0x8] ss:$0 sm:$0xff] }
 0x163   : > { %v711_v37 = vmax.f32 %v561_v31, 0.0  ;;  %v2531_v38 = vpop.f32.mrb[4].mxu0 }
 0x164   : > { %786 = vst.msk [vmem:[#allocation2 + $0x39] sm:$0xff] %vm415_vm1, %v712_v35  ;;  %v576_v41 = vadd.f32 %v2531_v38, %v2889_v8  ;;  %v570_v42 = vpop.f32.mrb[5].mxu0 }
 0x165   : > { %785 = vst.msk [vmem:[#allocation2 + $0x31] sm:$0xff] %vm415_vm1, %v711_v37  ;;  %v571_v46 = vadd.f32 %v2889_v8, %v570_v42 }
 0x166   : > { %v714_v50 = vmax.f32 %v576_v41, 0.0 }
 0x167   : > { %v713_v52 = vmax.f32 %v571_v46, 0.0  ;;  %v2534_v53 = vpop.f32.mrb[6].mxu0  ;;  %v1027_v55 = vld [vmem:[#allocation2 + $0x21] sm:$0xff] }
 0x168   : > { %v2931_v56 = vld [vmem:[#allocation2 + $0x22] sm:$0xff]  ;;  %788 = vst.msk [vmem:[#allocation2 + $0x51] sm:$0xff] %vm415_vm1, %v714_v50  ;;  %v586_v57 = vadd.f32 %v2534_v53, %v2889_v8  ;;  %v580_v58 = vpop.f32.mrb[7].mxu0  ;;  %v974_v59 = vld [vmem:[#allocation2 + $0x18] sm:$0xff]  ;;  %v1047_v4 = vmul.f32 %v2925_v48, %v1027_v55  ;;  %v893_v23 = vmul.f32 %v1027_v55, %v2895_v11 }
 0x169   : > { %v1026_v60 = vld [vmem:[#allocation2 + $0x19] sm:$0xff]  ;;  %787 = vst.msk [vmem:[#allocation2 + $0x49] sm:$0xff] %vm415_vm1, %v713_v52  ;;  %v581_v63 = vadd.f32 %v2889_v8, %v580_v58  ;;  %v994_v0 = vmul.f32 %v2922_v47, %v974_v59  ;;  %v1099_v12 = vmul.f32 %v2929_v51, %v2931_v56  ;;  %v840_v17 = vmul.f32 %v974_v59, %v2892_v10 }
 0x16a   : > { %v1078_v1 = vld [vmem:[#allocation2 + $0x1a] sm:$0xff]  ;;  %v716_v5 = vmax.f32 %v586_v57, 0.0  ;;  %v1046_v6 = vmul.f32 %v2925_v48, %v1026_v60  ;;  %v892_v7 = vmul.f32 %v1026_v60, %v2895_v11 }
 0x16b   : > { %v975_v3 = vld [vmem:[#allocation2 + $0x20] sm:$0xff]  ;;  %v715_v13 = vmax.f32 %v581_v63, 0.0  ;;  %v2537_v14 = vpop.f32.mrb[8].mxu0  ;;  %v1010_v15 = vadd.f32 %v994_v0, %v958_v54  ;;  %v1098_v20 = vmul.f32 %v2929_v51, %v1078_v1  ;;  %v944_v30 = vmul.f32 %v1078_v1, %v2903_v25 }
 0x16c   : > { %v995_v9 = vmul.f32 %v2922_v47, %v975_v3  ;;  %v2949_v16 = vld [vmem:[#allocation2 + $0x39] sm:$0xff]  ;;  %790 = vst.msk [vmem:[#allocation2 + $0x69] sm:$0xff] %vm415_vm1, %v716_v5  ;;  %v596_v18 = vadd.f32 %v2537_v14, %v2889_v8  ;;  %v590_v19 = vpop.f32.mrb[9].mxu0  ;;  %v2956_v21 = vld [vmem:[#allocation2 + $0x30] sm:$0xff]  ;;  %v841_v31 = vmul.f32 %v975_v3, %v2892_v10  ;;  %v908_v41 = vadd.f32 %v892_v7, %v840_v17 }
 0x16d   : > { %789 = vst.msk [vmem:[#allocation2 + $0x61] sm:$0xff] %vm415_vm1, %v715_v13  ;;  %v591_v24 = vadd.f32 %v2889_v8, %v590_v19  ;;  %v1062_v27 = vadd.f32 %v1046_v6, %v1010_v15  ;;  %v2966_v28 = vld [vmem:[#allocation2 + $0x38] sm:$0xff]  ;;  %v1151_v33 = vmul.f32 %v2942_v2, %v2956_v21  ;;  %v1204_v36 = vmul.f32 %v2936_v61, %v2949_v16  ;;  %v3003_v6 = vld [vmem:[%s3841_s4] ss:$0 sm:$0xff] }
 0x16e   : > { %v1011_v22 = vadd.f32 %v995_v9, %v959_v62  ;;  %v2968_v29 = vld [vmem:[#allocation2 + $0x3a] sm:$0xff]  ;;  %v718_v32 = vmax.f32 %v596_v18, 0.0  ;;  %v2974_v34 = vld [vmem:[#allocation2 + $0x31] sm:$0xff]  ;;  %v996_v42 = vmul.f32 %v2956_v21, %v2922_v47  ;;  %v1152_v46 = vmul.f32 %v2942_v2, %v2966_v28 }
 0x16f   : > { %v717_v37 = vmax.f32 %v591_v24, 0.0  ;;  %v2540_v38 = vpop.f32.mrb[10].mxu0  ;;  %v1114_v39 = vadd.f32 %v1098_v20, %v1062_v27  ;;  %v2978_v40 = vld [vmem:[#allocation2 + $0x32] sm:$0xff]  ;;  %v1256_v49 = vmul.f32 %v2964_v26, %v2968_v29  ;;  %v1203_v53 = vmul.f32 %v2936_v61, %v2974_v34 }
 0x170   : > { %v1063_v35 = vadd.f32 %v1047_v4, %v1011_v22  ;;  %792 = vst.msk [vmem:[#allocation2 + $0x81] sm:$0xff] %vm415_vm1, %v718_v32  ;;  %v606_v43 = vadd.f32 %v2540_v38, %v2889_v8  ;;  %v600_v44 = vpop.f32.mrb[11].mxu0  ;;  %v960_v54 = vadd.f32 %v944_v30, %v908_v41  ;;  %v1255_v57 = vmul.f32 %v2964_v26, %v2978_v40  ;;  %v2996_v1 = vld [vmem:[#allocation2 + $0x48] sm:$0xff] }
 0x171   : > { %791 = vst.msk [vmem:[#allocation2 + $0x79] sm:$0xff] %vm415_vm1, %v717_v37  ;;  %v601_v50 = vadd.f32 %v2889_v8, %v600_v44  ;;  %v1167_v52 = vadd.f32 %v1151_v33, %v1114_v39  ;;  %v1048_v59 = vmul.f32 %v2974_v34, %v2925_v48  ;;  %v909_v3 = vadd.f32 %v893_v23, %v841_v31  ;;  %v3017_v23 = vld [vmem:[#allocation2 + $0x4a] sm:$0xff] }
 0x172   : > { %v1115_v45 = vadd.f32 %v1099_v12, %v1063_v35  ;;  %v720_v55 = vmax.f32 %v606_v43, 0.0  ;;  %v1012_v0 = vadd.f32 %v996_v42, %v960_v54  ;;  %v3005_v12 = vld [vmem:[#allocation2 + $0x49] sm:$0xff]  ;;  %v945_v13 = vmul.f32 %v2931_v56, %v2903_v25 }
 0x173   : > { %v719_v60 = vmax.f32 %v601_v50, 0.0  ;;  %v2543_v62 = vpop.f32.mrb[12].mxu0  ;;  %v1219_v63 = vadd.f32 %v1203_v53, %v1167_v52  ;;  %v997_v14 = vmul.f32 %v2966_v28, %v2922_v47  ;;  %v1100_v18 = vmul.f32 %v2978_v40, %v2929_v51  ;;  %v3027_v39 = vld [vmem:[#allocation2 + $0x50] sm:$0xff] }
 0x174   : > { %v1168_v58 = vadd.f32 %v1152_v46, %v1115_v45  ;;  %794 = vst.msk [vmem:[#allocation2 + $0x99] sm:$0xff] %vm415_vm1, %v720_v55  ;;  %v616_v4 = vadd.f32 %v2543_v62, %v2889_v8  ;;  %v610_v5 = vpop.f32.mrb[13].mxu0  ;;  %v1064_v7 = vadd.f32 %v1048_v59, %v1012_v0  ;;  %v1153_v22 = vmul.f32 %v2942_v2, %v2996_v1  ;;  %v3039_v50 = vld [vmem:[#allocation2 + $0x51] sm:$0xff] }
 0x175   : > { %793 = vst.msk [vmem:[#allocation2 + $0x91] sm:$0xff] %vm415_vm1, %v719_v60  ;;  %v611_v15 = vadd.f32 %v2889_v8, %v610_v5  ;;  %v1271_v17 = vadd.f32 %v1255_v57, %v1219_v63  ;;  %v961_v56 = vadd.f32 %v945_v13, %v909_v3  ;;  %v1205_v32 = vmul.f32 %v2936_v61, %v3005_v12 }
 0x176   : > { %v1220_v9 = vadd.f32 %v1204_v36, %v1168_v58  ;;  %v722_v19 = vmax.f32 %v616_v4, 0.0  ;;  %v1116_v31 = vadd.f32 %v1100_v18, %v1064_v7  ;;  %v1049_v38 = vmul.f32 %v2949_v16, %v2925_v48  ;;  %v3045_v58 = vld [vmem:[#allocation2 + $0x52] sm:$0xff] }
 0x177   : > { %v721_v24 = vmax.f32 %v611_v15, 0.0  ;;  %v2546_v27 = vpop.f32.mrb[14].mxu0  ;;  %v1293_v30 = vadd.f32 %v3003_v6, %v1271_v17  ;;  %v1013_v37 = vadd.f32 %v997_v14, %v961_v56  ;;  %v1257_v43 = vmul.f32 %v2964_v26, %v3017_v23 }
 0x178   : > { %v1272_v20 = vadd.f32 %v1256_v49, %v1220_v9  ;;  %796 = vst.msk [vmem:[#allocation2 + $0xb1] sm:$0xff] %vm415_vm1, %v722_v19  ;;  %v626_v33 = vadd.f32 %v2546_v27, %v2889_v8  ;;  %v620_v35 = vpop.f32.mrb[15].mxu0  ;;  %v1169_v42 = vadd.f32 %v1153_v22, %v1116_v31  ;;  %v842_v44 = vmul.f32 %v2956_v21, %v2892_v10  ;;  %v3068_v27 = vld [vmem:[#allocation2 + $0x60] sm:$0xff] }
 0x179   : > { %795 = vst.msk [vmem:[#allocation2 + $0xa9] sm:$0xff] %vm415_vm1, %v721_v24  ;;  %v621_v41 = vadd.f32 %v2889_v8, %v620_v35  ;;  %2573 = vmatprep.mubr.msk.f32.mxu1 %vm415_vm1, %v1293_v30  ;;  %v1065_v46 = vadd.f32 %v1049_v38, %v1013_v37  ;;  %v1101_v49 = vmul.f32 %v2968_v29, %v2929_v51  ;;  %v3070_v30 = vld [vmem:[#allocation2 + $0x61] sm:$0xff] }
 0x17a   : > { %v1294_v36 = vadd.f32 %v3003_v6, %v1272_v20  ;;  %v724_v45 = vmax.f32 %v626_v33, 0.0  ;;  %v894_v52 = vmul.f32 %v2974_v34, %v2895_v11  ;;  %v1221_v55 = vadd.f32 %v1205_v32, %v1169_v42 }
 0x17b   : > { %v723_v53 = vmax.f32 %v621_v41, 0.0  ;;  %v2549_v54 = vpop.f32.mrb[16].mxu0  ;;  %v1154_v57 = vmul.f32 %v2942_v2, %v3027_v39  ;;  %v946_v21 = vmul.f32 %v2978_v40, %v2903_v25  ;;  %v1117_v62 = vadd.f32 %v1101_v49, %v1065_v46 }
 0x17c   : > { %2574 = vmatmul.mubr.msk.f32.vlgmr.msra.gmra.mrb[0].mxu1 %vm415_vm1, %v1294_v36  ;;  %798 = vst.msk [vmem:[#allocation2 + $0xc9] sm:$0xff] %vm415_vm1, %v724_v45  ;;  %v636_v59 = vadd.f32 %v2549_v54, %v2889_v8  ;;  %v630_v60 = vpop.f32.mrb[17].mxu0  ;;  %v910_v63 = vadd.f32 %v894_v52, %v842_v44  ;;  %v998_v34 = vmul.f32 %v2996_v1, %v2922_v47 }
 0x17d   : > { %797 = vst.msk [vmem:[#allocation2 + $0xc1] sm:$0xff] %vm415_vm1, %v723_v53  ;;  %v631_v0 = vadd.f32 %v2889_v8, %v630_v60  ;;  %v1273_v3 = vadd.f32 %v1257_v43, %v1221_v55  ;;  %v1206_v4 = vmul.f32 %v2936_v61, %v3039_v50  ;;  %v1170_v40 = vadd.f32 %v1154_v57, %v1117_v62  ;;  %v1239_v53 = vld [vmem:[#allocation2 + $0x62] sm:$0xff] }
 0x17e   : > { %v726_v5 = vmax.f32 %v636_v59, 0.0  ;;  %v1258_v9 = vmul.f32 %v2964_v26, %v3045_v58  ;;  %v962_v13 = vadd.f32 %v946_v21, %v910_v63  ;;  %v843_v7 = vmul.f32 %v2966_v28, %v2892_v10  ;;  %v3091_v55 = vld [vmem:[#allocation2 + $0x68] sm:$0xff] }
 0x17f   : > { %v725_v14 = vmax.f32 %v631_v0, 0.0  ;;  %v1295_v15 = vadd.f32 %v3003_v6, %v1273_v3  ;;  %v2552_v17 = vpop.f32.mrb[18].mxu0  ;;  %v895_v18 = vmul.f32 %v2949_v16, %v2895_v11  ;;  %v1222_v19 = vadd.f32 %v1206_v4, %v1170_v40  ;;  %v3101_v63 = vld [vmem:[#allocation2 + $0x69] sm:$0xff] }
 0x180   : > { %800 = vst.msk [vmem:[#allocation2 + $0xe1] sm:$0xff] %vm415_vm1, %v726_v5  ;;  %v646_v20 = vadd.f32 %v2552_v17, %v2889_v8  ;;  %v640_v22 = vpop.f32.mrb[19].mxu0  ;;  %v1014_v56 = vadd.f32 %v998_v34, %v962_v13  ;;  %v1050_v24 = vmul.f32 %v3005_v12, %v2925_v48  ;;  %v947_v31 = vmul.f32 %v2968_v29, %v2903_v25  ;;  %v3105_v4 = vld [vmem:[#allocation2 + $0x6a] sm:$0xff] }
 0x181   : > { %799 = vst.msk [vmem:[#allocation2 + $0xd9] sm:$0xff] %vm415_vm1, %v725_v14  ;;  %2576 = vmatprep.mubr.msk.f32.mxu1 %vm415_vm1, %v1295_v15  ;;  %v641_v16 = vadd.f32 %v2889_v8, %v640_v22  ;;  %v911_v28 = vadd.f32 %v895_v18, %v843_v7  ;;  %v999_v32 = vmul.f32 %v3027_v39, %v2922_v47  ;;  %v3113_v15 = vld [vmem:[#allocation2 + $0x78] sm:$0xff] }
 0x182   : > { %v1274_v33 = vadd.f32 %v1258_v9, %v1222_v19  ;;  %v728_v35 = vmax.f32 %v646_v20, 0.0  ;;  %v1066_v36 = vadd.f32 %v1050_v24, %v1014_v56  ;;  %v1102_v37 = vmul.f32 %v3017_v23, %v2929_v51 }
 0x183   : > { %v727_v38 = vmax.f32 %v641_v16, 0.0  ;;  %v1155_v41 = vmul.f32 %v2942_v2, %v3068_v27  ;;  %v1207_v42 = vmul.f32 %v2936_v61, %v3070_v30  ;;  %v963_v43 = vadd.f32 %v947_v31, %v911_v28  ;;  %v2555_v44 = vpop.f32.mrb[20].mxu0 }
 0x184   : > { %v1296_v29 = vadd.f32 %v3003_v6, %v1274_v33  ;;  %802 = vst.msk [vmem:[#allocation2 + $0xf9] sm:$0xff] %vm415_vm1, %v728_v35  ;;  %v1118_v45 = vadd.f32 %v1102_v37, %v1066_v36  ;;  %v1051_v46 = vmul.f32 %v3039_v50, %v2925_v48  ;;  %v656_v49 = vadd.f32 %v2555_v44, %v2889_v8  ;;  %v650_v52 = vpop.f32.mrb[21].mxu0  ;;  %v3142_v44 = vld [vmem:[#allocation2 + $0x79] sm:$0xff] }
 0x185   : > { %801 = vst.msk [vmem:[#allocation2 + $0xf1] sm:$0xff] %vm415_vm1, %v727_v38  ;;  %v1015_v54 = vadd.f32 %v999_v32, %v963_v43  ;;  %v651_v57 = vadd.f32 %v2889_v8, %v650_v52  ;;  %v844_v21 = vmul.f32 %v2996_v1, %v2892_v10  ;;  %v896_v59 = vmul.f32 %v3005_v12, %v2895_v11 }
 0x186   : > { %2577 = vmatmul.mubr.msk.f32.gmra.mrb[2].mxu1 %vm415_vm1, %v1296_v29  ;;  %v1171_v60 = vadd.f32 %v1155_v41, %v1118_v45  ;;  %v1103_v62 = vmul.f32 %v3045_v58, %v2929_v51  ;;  %v730_v34 = vmax.f32 %v656_v49, 0.0  ;;  %v948_v0 = vmul.f32 %v3017_v23, %v2903_v25  ;;  %v3144_v29 = vld [vmem:[#allocation2 + $0x7a] sm:$0xff] }
 0x187   : > { %v1067_v3 = vadd.f32 %v1051_v46, %v1015_v54  ;;  %v729_v5 = vmax.f32 %v651_v57, 0.0  ;;  %v912_v1 = vadd.f32 %v896_v59, %v844_v21  ;;  %v1000_v12 = vmul.f32 %v3068_v27, %v2922_v47  ;;  %v2558_v40 = vpop.f32.mrb[22].mxu0  ;;  %v3151_v57 = vld [vmem:[#allocation2 + $0x80] sm:$0xff] }
 0x188   : > { %v1223_v9 = vadd.f32 %v1207_v42, %v1171_v60  ;;  %v1259_v13 = vmul.f32 %v2964_v26, %v1239_v53  ;;  %v1156_v14 = vmul.f32 %v2942_v2, %v3091_v55  ;;  %804 = vst.msk [vmem:[#allocation2 + $0x111] sm:$0xff] %vm415_vm1, %v730_v34  ;;  %v660_v23 = vpop.f32.mrb[23].mxu0  ;;  %v1208_v7 = vmul.f32 %v2936_v61, %v3101_v63  ;;  %v3156_v34 = vld [vmem:[#allocation2 + $0x81] sm:$0xff] }
 0x189   : > { %v1119_v17 = vadd.f32 %v1103_v62, %v1067_v3  ;;  %803 = vst.msk [vmem:[#allocation2 + $0x109] sm:$0xff] %vm415_vm1, %v729_v5  ;;  %v964_v18 = vadd.f32 %v948_v0, %v912_v1  ;;  %v845_v19 = vmul.f32 %v3027_v39, %v2892_v10  ;;  %v1260_v22 = vmul.f32 %v2964_v26, %v3105_v4 }
 0x18a   : > { %v1275_v20 = vadd.f32 %v1259_v13, %v1223_v9  ;;  %v1052_v56 = vmul.f32 %v3070_v30, %v2925_v48  ;;  %v897_v24 = vmul.f32 %v3039_v50, %v2895_v11  ;;  %v1104_v31 = vmul.f32 %v1239_v53, %v2929_v51 }
 0x18b   : > { %v1172_v16 = vadd.f32 %v1156_v14, %v1119_v17  ;;  %v1016_v28 = vadd.f32 %v1000_v12, %v964_v18  ;;  %v1157_v32 = vmul.f32 %v2942_v2, %v3113_v15  ;;  %v3129_v33 = vpop.f32.mrb[24].mxu0  ;;  %v949_v36 = vmul.f32 %v3045_v58, %v2903_v25  ;;  %v3178_v18 = vld [vmem:[#allocation2 + $0x90] sm:$0xff] }
 0x18c   : > { %v1297_v39 = vadd.f32 %v3003_v6, %v1275_v20  ;;  %v913_v35 = vadd.f32 %v897_v24, %v845_v19  ;;  %v1001_v37 = vmul.f32 %v3091_v55, %v2922_v47  ;;  %v3136_v38 = vpop.f32.mrb[25].mxu0  ;;  %v1053_v42 = vmul.f32 %v3101_v63, %v2925_v48 }
 0x18d   : > { %v1224_v50 = vadd.f32 %v1208_v7, %v1172_v16  ;;  %v1068_v41 = vadd.f32 %v1052_v56, %v1016_v28  ;;  %v666_v43 = vadd.f32 %v2558_v40, %v2889_v8  ;;  %v661_v58 = vadd.f32 %v2889_v8, %v660_v23  ;;  %v3167_v40 = vld [vmem:[#allocation2 + $0x82] sm:$0xff] }
 0x18e   : > { %2579 = vmatprep.mubr.msk.f32.mxu1 %vm415_vm1, %v1297_v39  ;;  %v965_v45 = vadd.f32 %v949_v36, %v913_v35  ;;  %v846_v46 = vmul.f32 %v3068_v27, %v2892_v10  ;;  %v898_v49 = vmul.f32 %v3070_v30, %v2895_v11  ;;  %v950_v59 = vmul.f32 %v1239_v53, %v2903_v25 }
 0x18f   : > { %v1276_v52 = vadd.f32 %v1260_v22, %v1224_v50  ;;  %v1120_v54 = vadd.f32 %v1104_v31, %v1068_v41  ;;  %v732_v21 = vmax.f32 %v666_v43, 0.0  ;;  %v3154_v60 = vpop.f32.mrb[26].mxu0  ;;  %v731_v0 = vmax.f32 %v661_v58, 0.0  ;;  %v3190_v31 = vld [vmem:[#allocation2 + $0x91] sm:$0xff] }
 0x190   : > { %v1017_v62 = vadd.f32 %v1001_v37, %v965_v45  ;;  %v914_v3 = vadd.f32 %v898_v49, %v846_v46  ;;  %v1002_v27 = vmul.f32 %v3113_v15, %v2922_v47  ;;  %v3160_v5 = vpop.f32.mrb[27].mxu0  ;;  %v1209_v12 = vmul.f32 %v2936_v61, %v3142_v44 }
 0x191   : > { %v1298_v30 = vadd.f32 %v3003_v6, %v1276_v52  ;;  %v1173_v1 = vadd.f32 %v1157_v32, %v1120_v54  ;;  %v1261_v53 = vmul.f32 %v2964_v26, %v3144_v29  ;;  %806 = vst.msk [vmem:[#allocation2 + $0x129] sm:$0xff] %vm415_vm1, %v732_v21  ;;  %v1105_v13 = vmul.f32 %v3105_v4, %v2929_v51 }
 0x192   : > { %v1069_v9 = vadd.f32 %v1053_v42, %v1017_v62  ;;  %v1158_v14 = vmul.f32 %v2942_v2, %v3151_v57  ;;  %805 = vst.msk [vmem:[#allocation2 + $0x121] sm:$0xff] %vm415_vm1, %v731_v0  ;;  %v966_v23 = vadd.f32 %v950_v59, %v914_v3  ;;  %v1210_v7 = vmul.f32 %v2936_v61, %v3156_v34  ;;  %v1243_v59 = vld [vmem:[#allocation2 + $0x92] sm:$0xff] }
 0x193   : > { %2580 = vmatmul.mubr.msk.f32.gmra.mrb[4].mxu1 %vm415_vm1, %v1298_v30  ;;  %v1225_v17 = vadd.f32 %v1209_v12, %v1173_v1  ;;  %v847_v19 = vmul.f32 %v3091_v55, %v2892_v10  ;;  %v899_v20 = vmul.f32 %v3101_v63, %v2895_v11  ;;  %v3184_v22 = vpop.f32.mrb[28].mxu0  ;;  %v1262_v24 = vmul.f32 %v2964_v26, %v3167_v40  ;;  %v3224_v1 = vld [vmem:[#allocation2 + $0x99] sm:$0xff] }
 0x194   : > { %v1121_v56 = vadd.f32 %v1105_v13, %v1069_v9  ;;  %v1018_v16 = vadd.f32 %v1002_v27, %v966_v23  ;;  %v1054_v28 = vmul.f32 %v3142_v44, %v2925_v48  ;;  %v3192_v32 = vpop.f32.mrb[29].mxu0  ;;  %v951_v55 = vmul.f32 %v3105_v4, %v2903_v25  ;;  %v3226_v9 = vld [vmem:[#allocation2 + $0x9a] sm:$0xff] }
 0x195   : > { %v1277_v39 = vadd.f32 %v1261_v53, %v1225_v17  ;;  %v915_v35 = vadd.f32 %v899_v20, %v847_v19  ;;  %v1003_v63 = vmul.f32 %v3151_v57, %v2922_v47  ;;  %v1106_v50 = vmul.f32 %v3144_v29, %v2929_v51  ;;  %v3238_v20 = vld [vmem:[#allocation2 + $0xa8] sm:$0xff] }
 0x196   : > { %v1174_v36 = vadd.f32 %v1158_v14, %v1121_v56  ;;  %v1070_v37 = vadd.f32 %v1054_v28, %v1018_v16  ;;  %v1159_v41 = vmul.f32 %v2942_v2, %v3178_v18  ;;  %v1211_v43 = vmul.f32 %v2936_v61, %v3190_v31 }
 0x197   : > { %v1299_v42 = vadd.f32 %v3003_v6, %v1277_v39  ;;  %v967_v45 = vadd.f32 %v951_v55, %v915_v35  ;;  %v676_v4 = vadd.f32 %v3129_v33, %v2889_v8  ;;  %v3207_v58 = vpop.f32.mrb[30].mxu0  ;;  %v671_v52 = vadd.f32 %v2889_v8, %v3136_v38  ;;  %v3218_v33 = vld [vmem:[#allocation2 + $0x98] sm:$0xff] }
 0x198   : > { %v1226_v46 = vadd.f32 %v1210_v7, %v1174_v36  ;;  %v1122_v49 = vadd.f32 %v1106_v50, %v1070_v37  ;;  %v848_v54 = vmul.f32 %v3113_v15, %v2892_v10  ;;  %v3213_v21 = vpop.f32.mrb[31].mxu0  ;;  %v1055_v0 = vmul.f32 %v3156_v34, %v2925_v48 }
 0x199   : > { %2582 = vmatprep.mubr.msk.f32.mxu1 %vm415_vm1, %v1299_v42  ;;  %v1019_v62 = vadd.f32 %v1003_v63, %v967_v45  ;;  %v734_v3 = vmax.f32 %v676_v4, 0.0  ;;  %v900_v27 = vmul.f32 %v3142_v44, %v2895_v11  ;;  %v1107_v15 = vmul.f32 %v3167_v40, %v2929_v51 }
 0x19a   : > { %v1278_v30 = vadd.f32 %v1262_v24, %v1226_v46  ;;  %v1175_v38 = vadd.f32 %v1159_v41, %v1122_v49  ;;  %v733_v12 = vmax.f32 %v671_v52, 0.0  ;;  %v952_v14 = vmul.f32 %v3144_v29, %v2903_v25  ;;  %v1193_v49 = vld [vmem:[#allocation2 + $0xa9] sm:$0xff] }
 0x19b   : > { %v1071_v53 = vadd.f32 %v1055_v0, %v1019_v62  ;;  %808 = vst.msk [vmem:[#allocation2 + $0x141] sm:$0xff] %vm415_vm1, %v734_v3  ;;  %v916_v13 = vadd.f32 %v900_v27, %v848_v54  ;;  %v1004_v44 = vmul.f32 %v3178_v18, %v2922_v47  ;;  %v1263_v7 = vmul.f32 %v2964_v26, %v1243_v59  ;;  %v3264_v52 = vld [vmem:[#allocation2 + $0xaa] sm:$0xff] }
 0x19c   : > { %v1300_v23 = vadd.f32 %v3003_v6, %v1278_v30  ;;  %v1227_v17 = vadd.f32 %v1211_v43, %v1175_v38  ;;  %v1160_v19 = vmul.f32 %v2942_v2, %v3218_v33  ;;  %807 = vst.msk [vmem:[#allocation2 + $0x139] sm:$0xff] %vm415_vm1, %v733_v12  ;;  %v1212_v24 = vmul.f32 %v2936_v61, %v3224_v1  ;;  %v3272_v30 = vld [vmem:[#allocation2 + $0xb0] sm:$0xff] }
 0x19d   : > { %v1123_v56 = vadd.f32 %v1107_v15, %v1071_v53  ;;  %v968_v29 = vadd.f32 %v952_v14, %v916_v13  ;;  %v849_v16 = vmul.f32 %v3151_v57, %v2892_v10  ;;  %v1264_v39 = vmul.f32 %v2964_v26, %v3226_v9  ;;  %v3275_v12 = vld [vmem:[#allocation2 + $0xb1] sm:$0xff] }
 0x19e   : > { %2583 = vmatmul.mubr.msk.f32.gmra.mrb[6].mxu1 %vm415_vm1, %v1300_v23  ;;  %v1279_v28 = vadd.f32 %v1263_v7, %v1227_v17  ;;  %v1056_v35 = vmul.f32 %v3190_v31, %v2925_v48  ;;  %v901_v55 = vmul.f32 %v3156_v34, %v2895_v11  ;;  %v1108_v37 = vmul.f32 %v1243_v59, %v2929_v51  ;;  %v3283_v23 = vld [vmem:[#allocation2 + $0xb2] sm:$0xff] }
 0x19f   : > { %v1176_v63 = vadd.f32 %v1160_v19, %v1123_v56  ;;  %v1020_v36 = vadd.f32 %v1004_v44, %v968_v29  ;;  %v1161_v50 = vmul.f32 %v2942_v2, %v3238_v20  ;;  %v953_v42 = vmul.f32 %v3167_v40, %v2903_v25  ;;  %v3294_v29 = vld [vmem:[#allocation2 + $0xc0] sm:$0xff] }
 0x1a0   : > { %v1301_v57 = vadd.f32 %v3003_v6, %v1279_v28  ;;  %v917_v41 = vadd.f32 %v901_v55, %v849_v16  ;;  %v1005_v43 = vmul.f32 %v3218_v33, %v2922_v47  ;;  %v1057_v34 = vmul.f32 %v3224_v1, %v2925_v48 }
 0x1a1   : > { %v1228_v45 = vadd.f32 %v1212_v24, %v1176_v63  ;;  %v1072_v4 = vadd.f32 %v1056_v35, %v1020_v36  ;;  %v686_v46 = vadd.f32 %v3154_v60, %v2889_v8  ;;  %v681_v40 = vadd.f32 %v2889_v8, %v3160_v5  ;;  %v3303_v36 = vld [vmem:[#allocation2 + $0xc1] sm:$0xff] }
 0x1a2   : > { %2585 = vmatprep.mubr.msk.f32.mxu1 %vm415_vm1, %v1301_v57  ;;  %v969_v54 = vadd.f32 %v953_v42, %v917_v41  ;;  %v850_v62 = vmul.f32 %v3178_v18, %v2892_v10  ;;  %v902_v0 = vmul.f32 %v3190_v31, %v2895_v11  ;;  %v954_v38 = vmul.f32 %v1243_v59, %v2903_v25 }
 0x1a3   : > { %v1280_v3 = vadd.f32 %v1264_v39, %v1228_v45  ;;  %v1124_v27 = vadd.f32 %v1108_v37, %v1072_v4  ;;  %v736_v60 = vmax.f32 %v686_v46, 0.0  ;;  %v735_v53 = vmax.f32 %v681_v40, 0.0 }
 0x1a4   : > { %v1021_v15 = vadd.f32 %v1005_v43, %v969_v54  ;;  %v918_v13 = vadd.f32 %v902_v0, %v850_v62  ;;  %v1006_v5 = vmul.f32 %v3238_v20, %v2922_v47  ;;  %v1213_v31 = vmul.f32 %v2936_v61, %v1193_v49  ;;  %v1247_v0 = vld [vmem:[#allocation2 + $0xc2] sm:$0xff] }
 0x1a5   : > { %v1302_v18 = vadd.f32 %v3003_v6, %v1280_v3  ;;  %v1177_v14 = vadd.f32 %v1161_v50, %v1124_v27  ;;  %v1265_v44 = vmul.f32 %v2964_v26, %v3264_v52  ;;  %810 = vst.msk [vmem:[#allocation2 + $0x159] sm:$0xff] %vm415_vm1, %v736_v60  ;;  %v1109_v17 = vmul.f32 %v3226_v9, %v2929_v51  ;;  %v3325_v60 = vld [vmem:[#allocation2 + $0xc8] sm:$0xff] }
 0x1a6   : > { %v1073_v59 = vadd.f32 %v1057_v34, %v1021_v15  ;;  %v1162_v7 = vmul.f32 %v2942_v2, %v3272_v30  ;;  %809 = vst.msk [vmem:[#allocation2 + $0x151] sm:$0xff] %vm415_vm1, %v735_v53  ;;  %v970_v19 = vadd.f32 %v954_v38, %v918_v13  ;;  %v1214_v24 = vmul.f32 %v2936_v61, %v3275_v12  ;;  %v3330_v13 = vld [vmem:[#allocation2 + $0xc9] sm:$0xff] }
 0x1a7   : > { %2586 = vmatmul.mubr.msk.f32.gmra.mrb[8].mxu1 %vm415_vm1, %v1302_v18  ;;  %v1229_v56 = vadd.f32 %v1213_v31, %v1177_v14  ;;  %v851_v16 = vmul.f32 %v3218_v33, %v2892_v10  ;;  %v903_v28 = vmul.f32 %v3224_v1, %v2895_v11  ;;  %v1266_v35 = vmul.f32 %v2964_v26, %v3283_v23  ;;  %v3332_v18 = vld [vmem:[#allocation2 + $0xca] sm:$0xff] }
 0x1a8   : > { %v1125_v39 = vadd.f32 %v1109_v17, %v1073_v59  ;;  %v1022_v55 = vadd.f32 %v1006_v5, %v970_v19  ;;  %v1058_v63 = vmul.f32 %v1193_v49, %v2925_v48  ;;  %v955_v57 = vmul.f32 %v3226_v9, %v2903_v25  ;;  %v3344_v19 = vld [vmem:[#allocation2 + $0xd8] sm:$0xff] }
 0x1a9   : > { %v1281_v37 = vadd.f32 %v1265_v44, %v1229_v56  ;;  %v919_v50 = vadd.f32 %v903_v28, %v851_v16  ;;  %v1007_v33 = vmul.f32 %v3272_v30, %v2922_v47  ;;  %v1110_v1 = vmul.f32 %v3264_v52, %v2929_v51 }
 0x1aa   : > { %v1178_v41 = vadd.f32 %v1162_v7, %v1125_v39  ;;  %v1074_v42 = vadd.f32 %v1058_v63, %v1022_v55  ;;  %v1163_v43 = vmul.f32 %v2942_v2, %v3294_v29  ;;  %v1215_v4 = vmul.f32 %v2936_v61, %v3303_v36 }
 0x1ab   : > { %v1303_v45 = vadd.f32 %v3003_v6, %v1281_v37  ;;  %v971_v34 = vadd.f32 %v955_v57, %v919_v50  ;;  %v696_v9 = vadd.f32 %v3184_v22, %v2889_v8  ;;  %v691_v40 = vadd.f32 %v2889_v8, %v3192_v32 }
 0x1ac   : > { %v1230_v46 = vadd.f32 %v1214_v24, %v1178_v41  ;;  %v1126_v54 = vadd.f32 %v1110_v1, %v1074_v42  ;;  %v852_v62 = vmul.f32 %v3238_v20, %v2892_v10  ;;  %v1059_v27 = vmul.f32 %v3275_v12, %v2925_v48 }
 0x1ad   : > { %2588 = vmatprep.mubr.msk.f32.mxu1 %vm415_vm1, %v1303_v45  ;;  %v1023_v3 = vadd.f32 %v1007_v33, %v971_v34  ;;  %v738_v38 = vmax.f32 %v696_v9, 0.0  ;;  %v904_v22 = vmul.f32 %v1193_v49, %v2895_v11  ;;  %v1111_v32 = vmul.f32 %v3283_v23, %v2929_v51 }
 0x1ae   : > { %v1282_v15 = vadd.f32 %v1266_v35, %v1230_v46  ;;  %v1179_v53 = vadd.f32 %v1163_v43, %v1126_v54  ;;  %v737_v20 = vmax.f32 %v691_v40, 0.0  ;;  %v956_v31 = vmul.f32 %v3264_v52, %v2903_v25 }
 0x1af   : > { %v1075_v5 = vadd.f32 %v1059_v27, %v1023_v3  ;;  %812 = vst.msk [vmem:[#allocation2 + $0x171] sm:$0xff] %vm415_vm1, %v738_v38  ;;  %v920_v14 = vadd.f32 %v904_v22, %v852_v62  ;;  %v1008_v49 = vmul.f32 %v3294_v29, %v2922_v47  ;;  %v1267_v17 = vmul.f32 %v2964_v26, %v1247_v0  ;;  %v1249_v62 = vld [vmem:[#allocation2 + $0xda] sm:$0xff] }
 0x1b0   : > { %v1304_v44 = vadd.f32 %v3003_v6, %v1282_v15  ;;  %v1231_v59 = vadd.f32 %v1215_v4, %v1179_v53  ;;  %v1164_v7 = vmul.f32 %v2942_v2, %v3325_v60  ;;  %811 = vst.msk [vmem:[#allocation2 + $0x169] sm:$0xff] %vm415_vm1, %v737_v20  ;;  %v1216_v24 = vmul.f32 %v2936_v61, %v3330_v13  ;;  %v1197_v4 = vld [vmem:[#allocation2 + $0xd9] sm:$0xff] }
 0x1b1   : > { %v1127_v56 = vadd.f32 %v1111_v32, %v1075_v5  ;;  %v972_v52 = vadd.f32 %v956_v31, %v920_v14  ;;  %v853_v16 = vmul.f32 %v3272_v30, %v2892_v10  ;;  %v1268_v39 = vmul.f32 %v2964_v26, %v3332_v18  ;;  %v1146_v38 = vld [vmem:[#allocation2 + $0xe0] sm:$0xff] }
 0x1b2   : > { %2589 = vmatmul.mubr.msk.f32.gmra.mrb[10].mxu1 %vm415_vm1, %v1304_v44  ;;  %v1283_v28 = vadd.f32 %v1267_v17, %v1231_v59  ;;  %v1060_v35 = vmul.f32 %v3303_v36, %v2925_v48  ;;  %v905_v55 = vmul.f32 %v3275_v12, %v2895_v11  ;;  %v1112_v50 = vmul.f32 %v1247_v0, %v2929_v51  ;;  %v1198_v32 = vld [vmem:[#allocation2 + $0xe1] sm:$0xff] }
 0x1b3   : > { %v1180_v63 = vadd.f32 %v1164_v7, %v1127_v56  ;;  %v1024_v37 = vadd.f32 %v1008_v49, %v972_v52  ;;  %v1165_v57 = vmul.f32 %v2942_v2, %v3344_v19  ;;  %v957_v41 = vmul.f32 %v3283_v23, %v2903_v25  ;;  %v1250_v49 = vld [vmem:[#allocation2 + $0xe2] sm:$0xff]  ;;  %v1600_v52 = vld [vmem:[#allocation2 + $0xf0] sm:$0xff] }
 0x1b4   : > { %v1305_v30 = vadd.f32 %v3003_v6, %v1283_v28  ;;  %v921_v33 = vadd.f32 %v905_v55, %v853_v16  ;;  %v1009_v42 = vmul.f32 %v3325_v60, %v2922_v47  ;;  %v1061_v12 = vmul.f32 %v3330_v13, %v2925_v48  ;;  %v1648_v28 = vld [vmem:[#allocation2 + $0xf1] sm:$0xff] }
 0x1b5   : > { %v1232_v1 = vadd.f32 %v1216_v24, %v1180_v63  ;;  %v1076_v43 = vadd.f32 %v1060_v35, %v1024_v37  ;;  %v706_v45 = vadd.f32 %v3207_v58, %v2889_v8  ;;  %v701_v9 = vadd.f32 %v2889_v8, %v3213_v21 }
 0x1b6   : > { %2591 = vmatprep.mubr.msk.f32.mxu1 %vm415_vm1, %v1305_v30  ;;  %v973_v34 = vadd.f32 %v957_v41, %v921_v33  ;;  %v1326_v23 = vmul.f32 %v3294_v29, %v2892_v10  ;;  %v1374_v46 = vmul.f32 %v3303_v36, %v2895_v11  ;;  %v1422_v27 = vmul.f32 %v1247_v0, %v2903_v25 }
 0x1b7   : > { %v1284_v54 = vadd.f32 %v1268_v39, %v1232_v1  ;;  %v1128_v40 = vadd.f32 %v1112_v50, %v1076_v43  ;;  %v740_v3 = vmax.f32 %v706_v45, 0.0  ;;  %v739_v22 = vmax.f32 %v701_v9, 0.0  ;;  %v3399_v50 = vld [vmem:[#allocation2 + $0xf2] sm:$0xff] }
 0x1b8   : > { %v1025_v58 = vadd.f32 %v1009_v42, %v973_v34  ;;  %v1390_v15 = vadd.f32 %v1374_v46, %v1326_v23  ;;  %v1471_v53 = vmul.f32 %v3344_v19, %v2922_v47  ;;  %v1217_v29 = vmul.f32 %v2936_v61, %v1197_v4  ;;  %v1601_v43 = vld [vmem:[#allocation2 + $0xf8] sm:$0xff] }
 0x1b9   : > { %v1306_v8 = vadd.f32 %v3003_v6, %v1284_v54  ;;  %v1181_v21 = vadd.f32 %v1165_v57, %v1128_v40  ;;  %814 = vst.msk [vmem:[#allocation2 + $0x189] sm:$0xff] %vm415_vm1, %v740_v3  ;;  %v1269_v36 = vmul.f32 %v2964_v26, %v1249_v62  ;;  %v1113_v0 = vmul.f32 %v3332_v18, %v2929_v51 }
 0x1ba   : > { %v1077_v20 = vadd.f32 %v1061_v12, %v1025_v58  ;;  %813 = vst.msk [vmem:[#allocation2 + $0x181] sm:$0xff] %vm415_vm1, %v739_v22  ;;  %v1438_v5 = vadd.f32 %v1422_v27, %v1390_v15  ;;  %v1166_v31 = vmul.f32 %v2942_v2, %v1146_v38  ;;  %v1327_v44 = vmul.f32 %v3325_v60, %v2892_v10 }
 0x1bb   : > { %2592 = vmatmul.mubr.msk.f32.gmra.mrb[12].mxu1 %vm415_vm1, %v1306_v8  ;;  %v1233_v14 = vadd.f32 %v1217_v29, %v1181_v21  ;;  %v1375_v59 = vmul.f32 %v3330_v13, %v2895_v11  ;;  %v1218_v7 = vmul.f32 %v2936_v61, %v1198_v32  ;;  %v1519_v24 = vmul.f32 %v1197_v4, %v2925_v48  ;;  %v1697_v8 = vld [vmem:[#allocation2 + $0xfa] sm:$0xff]  ;;  %v3417_v29 = vld [vmem:[#allocation2 + $0x108] sm:$0xff] }
 0x1bc   : > { %v1129_v17 = vadd.f32 %v1113_v0, %v1077_v20  ;;  %v1487_v56 = vadd.f32 %v1471_v53, %v1438_v5  ;;  %v1423_v35 = vmul.f32 %v3332_v18, %v2903_v25  ;;  %v1472_v55 = vmul.f32 %v1146_v38, %v2922_v47 }
 0x1bd   : > { %v1285_v16 = vadd.f32 %v1269_v36, %v1233_v14  ;;  %v1391_v39 = vadd.f32 %v1375_v59, %v1327_v44  ;;  %v1270_v60 = vmul.f32 %v2964_v26, %v1250_v49  ;;  %v1567_v13 = vmul.f32 %v1249_v62, %v2929_v51  ;;  %v1698_v44 = vld [vmem:[#allocation2 + $0x10a] sm:$0xff] }
 0x1be   : > { %v1182_v63 = vadd.f32 %v1166_v31, %v1129_v17  ;;  %v1535_v37 = vadd.f32 %v1519_v24, %v1487_v56  ;;  %v1616_v30 = vmul.f32 %v1600_v52, %v2942_v2  ;;  %v1328_v41 = vmul.f32 %v3344_v19, %v2892_v10  ;;  %v1649_v19 = vld [vmem:[#allocation2 + $0xf9] sm:$0xff]  ;;  %v1650_v31 = vld [vmem:[#allocation2 + $0x109] sm:$0xff] }
 0x1bf   : > { %v1307_v57 = vadd.f32 %v3003_v6, %v1285_v16  ;;  %v1439_v33 = vadd.f32 %v1423_v35, %v1391_v39  ;;  %v1664_v1 = vmul.f32 %v1648_v28, %v2936_v61  ;;  %v1376_v12 = vmul.f32 %v1197_v4, %v2895_v11 }
 0x1c0   : > { %v1234_v42 = vadd.f32 %v1218_v7, %v1182_v63  ;;  %v1583_v18 = vadd.f32 %v1567_v13, %v1535_v37  ;;  %v1712_v45 = vmul.f32 %v2964_v26, %v3399_v50  ;;  %v1520_v9 = vmul.f32 %v1198_v32, %v2925_v48  ;;  %v3434_v37 = vld [vmem:[#allocation2 + $0x110] sm:$0xff] }
 0x1c1   : > { %2594 = vmatprep.mubr.msk.f32.mxu1 %vm415_vm1, %v1307_v57  ;;  %v1488_v34 = vadd.f32 %v1472_v55, %v1439_v33  ;;  %v1424_v23 = vmul.f32 %v1249_v62, %v2903_v25  ;;  %v1392_v40 = vadd.f32 %v1376_v12, %v1328_v41  ;;  %v1473_v3 = vmul.f32 %v1600_v52, %v2922_v47 }
 0x1c2   : > { %v1286_v46 = vadd.f32 %v1270_v60, %v1234_v42  ;;  %v1632_v54 = vadd.f32 %v1616_v30, %v1583_v18  ;;  %v1568_v58 = vmul.f32 %v1250_v49, %v2929_v51  ;;  %v1617_v4 = vmul.f32 %v1601_v43, %v2942_v2  ;;  %v1651_v42 = vld [vmem:[#allocation2 + $0x111] sm:$0xff] }
 0x1c3   : > { %v1536_v27 = vadd.f32 %v1520_v9, %v1488_v34  ;;  %v1329_v22 = vmul.f32 %v1146_v38, %v2892_v10  ;;  %v1440_v21 = vadd.f32 %v1424_v23, %v1392_v40  ;;  %v1377_v62 = vmul.f32 %v1198_v32, %v2895_v11 }
 0x1c4   : > { %v1308_v15 = vadd.f32 %v3003_v6, %v1286_v46  ;;  %v1680_v53 = vadd.f32 %v1664_v1, %v1632_v54  ;;  %v1665_v20 = vmul.f32 %v1649_v19, %v2936_v61  ;;  %v1521_v0 = vmul.f32 %v1648_v28, %v2925_v48 }
 0x1c5   : > { %v1584_v36 = vadd.f32 %v1568_v58, %v1536_v27  ;;  %v1425_v5 = vmul.f32 %v1250_v49, %v2903_v25  ;;  %v1489_v38 = vadd.f32 %v1473_v3, %v1440_v21  ;;  %v1393_v59 = vadd.f32 %v1377_v62, %v1329_v22  ;;  %v3451_v3 = vld [vmem:[#allocation2 + $0x120] sm:$0xff] }
 0x1c6   : > { %2595 = vmatmul.mubr.msk.f32.gmra.mrb[14].mxu1 %vm415_vm1, %v1308_v15  ;;  %v1728_v14 = vadd.f32 %v1712_v45, %v1680_v53  ;;  %v1474_v17 = vmul.f32 %v1601_v43, %v2922_v47  ;;  %v1713_v56 = vmul.f32 %v2964_v26, %v1697_v8  ;;  %v1569_v32 = vmul.f32 %v3399_v50, %v2929_v51 }
 0x1c7   : > { %v1633_v7 = vadd.f32 %v1617_v4, %v1584_v36  ;;  %v1618_v24 = vmul.f32 %v3417_v29, %v2942_v2  ;;  %v1537_v16 = vadd.f32 %v1521_v0, %v1489_v38  ;;  %v1441_v39 = vadd.f32 %v1425_v5, %v1393_v59  ;;  %v1700_v5 = vld [vmem:[#allocation2 + $0x122] sm:$0xff] }
 0x1c8   : > { %v1744_v49 = vadd.f32 %v3003_v6, %v1728_v14  ;;  %v1330_v35 = vmul.f32 %v1600_v52, %v2892_v10  ;;  %v1666_v63 = vmul.f32 %v1650_v31, %v2936_v61  ;;  %v1714_v60 = vmul.f32 %v2964_v26, %v1698_v44  ;;  %v3440_v52 = vld [vmem:[#allocation2 + $0x112] sm:$0xff] }
 0x1c9   : > { %v1681_v55 = vadd.f32 %v1665_v20, %v1633_v7  ;;  %v1378_v13 = vmul.f32 %v1648_v28, %v2895_v11  ;;  %v1585_v57 = vadd.f32 %v1569_v32, %v1537_v16  ;;  %v1490_v30 = vadd.f32 %v1474_v17, %v1441_v39  ;;  %v1653_v16 = vld [vmem:[#allocation2 + $0x129] sm:$0xff] }
 0x1ca   : > { %2597 = vmatprep.mubr.msk.f32.mxu1 %vm415_vm1, %v1744_v49  ;;  %v1522_v33 = vmul.f32 %v1649_v19, %v2925_v48  ;;  %v1570_v41 = vmul.f32 %v1697_v8, %v2929_v51  ;;  %v1426_v12 = vmul.f32 %v3399_v50, %v2903_v25  ;;  %v1475_v45 = vmul.f32 %v3417_v29, %v2922_v47 }
 0x1cb   : > { %v1729_v18 = vadd.f32 %v1713_v56, %v1681_v55  ;;  %v1394_v1 = vadd.f32 %v1378_v13, %v1330_v35  ;;  %v1634_v28 = vadd.f32 %v1618_v24, %v1585_v57  ;;  %v1619_v9 = vmul.f32 %v3434_v37, %v2942_v2  ;;  %v3469_v56 = vld [vmem:[#allocation2 + $0x128] sm:$0xff] }
 0x1cc   : > { %v1538_v34 = vadd.f32 %v1522_v33, %v1490_v30  ;;  %v1331_v23 = vmul.f32 %v1601_v43, %v2892_v10  ;;  %v1667_v54 = vmul.f32 %v1651_v42, %v2936_v61  ;;  %v1379_v27 = vmul.f32 %v1649_v19, %v2895_v11  ;;  %v3479_v55 = vld [vmem:[%s3840_s3 + $0x8] ss:$0 sm:$0xff]  ;;  %v1701_v30 = vld [vmem:[#allocation2 + $0x12a] sm:$0xff] }
 0x1cd   : > { %v1745_v46 = vadd.f32 %v3003_v6, %v1729_v18  ;;  %v1442_v40 = vadd.f32 %v1426_v12, %v1394_v1  ;;  %v1682_v50 = vadd.f32 %v1666_v63, %v1634_v28  ;;  %v1715_v4 = vmul.f32 %v2964_v26, %v3440_v52  ;;  %v1652_v26 = vld [vmem:[#allocation2 + $0x121] sm:$0xff] }
 0x1ce   : > { %v1586_v58 = vadd.f32 %v1570_v41, %v1538_v34  ;;  %v1523_v22 = vmul.f32 %v1650_v31, %v2925_v48  ;;  %v1395_v43 = vadd.f32 %v1379_v27, %v1331_v23  ;;  %v1427_v53 = vmul.f32 %v1697_v8, %v2903_v25  ;;  %v1606_v23 = vld [vmem:[#allocation2 + $0x138] sm:$0xff] }
 0x1cf   : > { %2598 = vmatmul.mubr.msk.f32.gmra.mrb[16].mxu1 %vm415_vm1, %v1745_v46  ;;  %v1491_v15 = vadd.f32 %v1475_v45, %v1442_v40  ;;  %v1476_v21 = vmul.f32 %v3434_v37, %v2922_v47  ;;  %v1730_v62 = vadd.f32 %v1714_v60, %v1682_v50  ;;  %v1571_v19 = vmul.f32 %v1698_v44, %v2929_v51 }
 0x1d0   : > { %v1635_v36 = vadd.f32 %v1619_v9, %v1586_v58  ;;  %v1620_v20 = vmul.f32 %v3451_v3, %v2942_v2  ;;  %v1443_v14 = vadd.f32 %v1427_v53, %v1395_v43  ;;  %v1332_v38 = vmul.f32 %v3417_v29, %v2892_v10 }
 0x1d1   : > { %v1539_v0 = vadd.f32 %v1523_v22, %v1491_v15  ;;  %v1380_v59 = vmul.f32 %v1650_v31, %v2895_v11  ;;  %v1746_v8 = vadd.f32 %v3003_v6, %v1730_v62  ;;  %v1524_v7 = vmul.f32 %v1651_v42, %v2925_v48  ;;  %v1702_v22 = vld [vmem:[#allocation2 + $0x13a] sm:$0xff] }
 0x1d2   : > { %v1683_v17 = vadd.f32 %v1667_v54, %v1635_v36  ;;  %v1428_v32 = vmul.f32 %v1698_v44, %v2903_v25  ;;  %v1492_v49 = vadd.f32 %v1476_v21, %v1443_v14  ;;  %v1477_v35 = vmul.f32 %v3451_v3, %v2922_v47 }
 0x1d3   : > { %v1587_v24 = vadd.f32 %v1571_v19, %v1539_v0  ;;  %v1396_v39 = vadd.f32 %v1380_v59, %v1332_v38  ;;  %2600 = vmatprep.mubr.msk.f32.mxu1 %vm415_vm1, %v1746_v8  ;;  %v1668_v31 = vmul.f32 %v1652_v26, %v2936_v61  ;;  %v1716_v63 = vmul.f32 %v3479_v55, %v1700_v5 }
 0x1d4   : > { %v1731_v29 = vadd.f32 %v1715_v4, %v1683_v17  ;;  %v1572_v44 = vmul.f32 %v3440_v52, %v2929_v51  ;;  %v1540_v13 = vadd.f32 %v1524_v7, %v1492_v49  ;;  %v1621_v57 = vmul.f32 %v3469_v56, %v2942_v2  ;;  %v1654_v4 = vld [vmem:[#allocation2 + $0x139] sm:$0xff]  ;;  %v1655_v7 = vld [vmem:[#allocation2 + $0x141] sm:$0xff] }
 0x1d5   : > { %v1636_v60 = vadd.f32 %v1620_v20, %v1587_v24  ;;  %v1444_v33 = vadd.f32 %v1428_v32, %v1396_v39  ;;  %v1669_v18 = vmul.f32 %v1653_v16, %v2936_v61  ;;  %v1333_v1 = vmul.f32 %v3434_v37, %v2892_v10  ;;  %v1607_v20 = vld [vmem:[#allocation2 + $0x140] sm:$0xff] }
 0x1d6   : > { %v1747_v41 = vadd.f32 %v3003_v6, %v1731_v29  ;;  %v1381_v12 = vmul.f32 %v1651_v42, %v2895_v11  ;;  %v1588_v28 = vadd.f32 %v1572_v44, %v1540_v13  ;;  %v1525_v9 = vmul.f32 %v1652_v26, %v2925_v48  ;;  %v1703_v29 = vld [vmem:[#allocation2 + $0x142] sm:$0xff] }
 0x1d7   : > { %v1684_v45 = vadd.f32 %v1668_v31, %v1636_v60  ;;  %v1493_v34 = vadd.f32 %v1477_v35, %v1444_v33  ;;  %v1717_v46 = vmul.f32 %v3479_v55, %v1701_v30  ;;  %v1429_v6 = vmul.f32 %v3440_v52, %v2903_v25  ;;  %v3506_v52 = vld [vmem:[%s3841_s4] ss:$0 sm:$0xff]  ;;  %v1608_v33 = vld [vmem:[#allocation2 + $0x150] sm:$0xff] }
 0x1d8   : > { %2601 = vmatmul.mubr.msk.f32.gmra.mrb[18].mxu1 %vm415_vm1, %v1747_v41  ;;  %v1397_v54 = vadd.f32 %v1381_v12, %v1333_v1  ;;  %v1478_v40 = vmul.f32 %v3469_v56, %v2922_v47  ;;  %v1637_v27 = vadd.f32 %v1621_v57, %v1588_v28  ;;  %v1573_v50 = vmul.f32 %v1700_v5, %v2929_v51 }
 0x1d9   : > { %v1732_v37 = vadd.f32 %v1716_v63, %v1684_v45  ;;  %v1541_v42 = vadd.f32 %v1525_v9, %v1493_v34  ;;  %v1622_v58 = vmul.f32 %v1606_v23, %v2942_v2  ;;  %v1334_v43 = vmul.f32 %v3451_v3, %v2892_v10  ;;  %v3528_v9 = vld [vmem:[#allocation2 + $0x152] sm:$0xff] }
 0x1da   : > { %v1445_v15 = vadd.f32 %v1429_v6, %v1397_v54  ;;  %v1382_v53 = vmul.f32 %v1652_v26, %v2895_v11  ;;  %v1685_v62 = vadd.f32 %v1669_v18, %v1637_v27  ;;  %v1526_v19 = vmul.f32 %v1653_v16, %v2925_v48  ;;  %v1656_v18 = vld [vmem:[#allocation2 + $0x151] sm:$0xff] }
 0x1db   : > { %v1748_v21 = vadd.f32 %v3506_v52, %v1732_v37  ;;  %v1589_v36 = vadd.f32 %v1573_v50, %v1541_v42  ;;  %v1430_v38 = vmul.f32 %v1700_v5, %v2903_v25  ;;  %v1479_v3 = vmul.f32 %v1606_v23, %v2922_v47  ;;  %v1609_v42 = vld [vmem:[#allocation2 + $0x158] sm:$0xff] }
 0x1dc   : > { %v1494_v0 = vadd.f32 %v1478_v40, %v1445_v15  ;;  %v1398_v14 = vadd.f32 %v1382_v53, %v1334_v43  ;;  %v1733_v26 = vadd.f32 %v1717_v46, %v1685_v62  ;;  %v1670_v8 = vmul.f32 %v1654_v4, %v2936_v61 }
 0x1dd   : > { %2603 = vmatprep.mubr.msk.f32.mxu1 %vm415_vm1, %v1748_v21  ;;  %v1638_v59 = vadd.f32 %v1622_v58, %v1589_v36  ;;  %v1718_v17 = vmul.f32 %v3479_v55, %v1702_v22  ;;  %v1574_v24 = vmul.f32 %v1701_v30, %v2929_v51  ;;  %v1623_v49 = vmul.f32 %v1607_v20, %v2942_v2 }
 0x1de   : > { %v1542_v32 = vadd.f32 %v1526_v19, %v1494_v0  ;;  %v1446_v39 = vadd.f32 %v1430_v38, %v1398_v14  ;;  %v1749_v35 = vadd.f32 %v3506_v52, %v1733_v26  ;;  %v1335_v31 = vmul.f32 %v3469_v56, %v2892_v10 }
 0x1df   : > { %v1686_v5 = vadd.f32 %v1670_v8, %v1638_v59  ;;  %v1383_v63 = vmul.f32 %v1653_v16, %v2895_v11  ;;  %v1671_v60 = vmul.f32 %v1655_v7, %v2936_v61  ;;  %v1527_v57 = vmul.f32 %v1654_v4, %v2925_v48  ;;  %v1705_v59 = vld [vmem:[#allocation2 + $0x15a] sm:$0xff] }
 0x1e0   : > { %v1590_v44 = vadd.f32 %v1574_v24, %v1542_v32  ;;  %v1495_v13 = vadd.f32 %v1479_v3, %v1446_v39  ;;  %2604 = vmatmul.mubr.msk.f32.gmra.mrb[20].mxu1 %vm415_vm1, %v1749_v35  ;;  %v1431_v12 = vmul.f32 %v1701_v30, %v2903_v25  ;;  %v1480_v45 = vmul.f32 %v1607_v20, %v2922_v47 }
 0x1e1   : > { %v1734_v41 = vadd.f32 %v1718_v17, %v1686_v5  ;;  %v1399_v1 = vadd.f32 %v1383_v63, %v1335_v31  ;;  %v1719_v56 = vmul.f32 %v3479_v55, %v1703_v29  ;;  %v1575_v34 = vmul.f32 %v1702_v22, %v2929_v51  ;;  %v3545_v17 = vld [vmem:[#allocation2 + $0x168] sm:$0xff] }
 0x1e2   : > { %v1639_v28 = vadd.f32 %v1623_v49, %v1590_v44  ;;  %v1543_v16 = vadd.f32 %v1527_v57, %v1495_v13  ;;  %v1624_v54 = vmul.f32 %v1608_v33, %v2942_v2  ;;  %v1336_v40 = vmul.f32 %v1606_v23, %v2892_v10  ;;  %v1657_v23 = vld [vmem:[#allocation2 + $0x159] sm:$0xff]  ;;  %v1658_v5 = vld [vmem:[#allocation2 + $0x169] sm:$0xff] }
 0x1e3   : > { %v1750_v46 = vadd.f32 %v3506_v52, %v1734_v41  ;;  %v1447_v6 = vadd.f32 %v1431_v12, %v1399_v1  ;;  %v1672_v30 = vmul.f32 %v1656_v18, %v2936_v61  ;;  %v1384_v50 = vmul.f32 %v1654_v4, %v2895_v11  ;;  %v1706_v31 = vld [vmem:[#allocation2 + $0x16a] sm:$0xff] }
 0x1e4   : > { %v1687_v37 = vadd.f32 %v1671_v60, %v1639_v28  ;;  %v1591_v27 = vadd.f32 %v1575_v34, %v1543_v16  ;;  %v1720_v58 = vmul.f32 %v3479_v55, %v3528_v9  ;;  %v1528_v43 = vmul.f32 %v1655_v7, %v2925_v48  ;;  %v3562_v16 = vld [vmem:[#allocation2 + $0x170] sm:$0xff] }
 0x1e5   : > { %2606 = vmatprep.mubr.msk.f32.mxu1 %vm415_vm1, %v1750_v46  ;;  %v1496_v15 = vadd.f32 %v1480_v45, %v1447_v6  ;;  %v1432_v53 = vmul.f32 %v1702_v22, %v2903_v25  ;;  %v1400_v36 = vadd.f32 %v1384_v50, %v1336_v40  ;;  %v1481_v19 = vmul.f32 %v1608_v33, %v2922_v47 }
 0x1e6   : > { %v1735_v21 = vadd.f32 %v1719_v56, %v1687_v37  ;;  %v1640_v62 = vadd.f32 %v1624_v54, %v1591_v27  ;;  %v1576_v14 = vmul.f32 %v1703_v29, %v2929_v51  ;;  %v1625_v4 = vmul.f32 %v1609_v42, %v2942_v2  ;;  %v1659_v37 = vld [vmem:[#allocation2 + $0x171] sm:$0xff] }
 0x1e7   : > { %v1544_v0 = vadd.f32 %v1528_v43, %v1496_v15  ;;  %v1337_v38 = vmul.f32 %v1607_v20, %v2892_v10  ;;  %v1448_v8 = vadd.f32 %v1432_v53, %v1400_v36  ;;  %v1385_v22 = vmul.f32 %v1655_v7, %v2895_v11 }
 0x1e8   : > { %v1751_v3 = vadd.f32 %v3506_v52, %v1735_v21  ;;  %v1688_v26 = vadd.f32 %v1672_v30, %v1640_v62  ;;  %v1673_v24 = vmul.f32 %v1657_v23, %v2936_v61  ;;  %v1529_v49 = vmul.f32 %v1656_v18, %v2925_v48 }
 0x1e9   : > { %v1592_v32 = vadd.f32 %v1576_v14, %v1544_v0  ;;  %v1433_v39 = vmul.f32 %v1703_v29, %v2903_v25  ;;  %v1497_v20 = vadd.f32 %v1481_v19, %v1448_v8  ;;  %v1401_v63 = vadd.f32 %v1385_v22, %v1337_v38  ;;  %v1612_v19 = vld [vmem:[#allocation2 + $0x180] sm:$0xff] }
 0x1ea   : > { %2607 = vmatmul.mubr.msk.f32.gmra.mrb[22].mxu1 %vm415_vm1, %v1751_v3  ;;  %v1736_v35 = vadd.f32 %v1720_v58, %v1688_v26  ;;  %v1482_v44 = vmul.f32 %v1609_v42, %v2922_v47  ;;  %v1721_v13 = vmul.f32 %v3479_v55, %v1705_v59  ;;  %v1577_v7 = vmul.f32 %v3528_v9, %v2929_v51 }
 0x1eb   : > { %v1641_v60 = vadd.f32 %v1625_v4, %v1592_v32  ;;  %v1626_v57 = vmul.f32 %v3545_v17, %v2942_v2  ;;  %v1545_v41 = vadd.f32 %v1529_v49, %v1497_v20  ;;  %v1449_v1 = vadd.f32 %v1433_v39, %v1401_v63  ;;  %v1660_v39 = vld [vmem:[#allocation2 + $0x181] sm:$0xff] }
 0x1ec   : > { %v1752_v29 = vadd.f32 %v3506_v52, %v1736_v35  ;;  %v1338_v12 = vmul.f32 %v1608_v33, %v2892_v10  ;;  %v1674_v28 = vmul.f32 %v1658_v5, %v2936_v61  ;;  %v1722_v56 = vmul.f32 %v3479_v55, %v1706_v31  ;;  %v3568_v33 = vld [vmem:[#allocation2 + $0x172] sm:$0xff]  ;;  %v1708_v35 = vld [vmem:[#allocation2 + $0x182] sm:$0xff] }
 0x1ed   : > { %v1689_v45 = vadd.f32 %v1673_v24, %v1641_v60  ;;  %v1386_v34 = vmul.f32 %v1656_v18, %v2895_v11  ;;  %v1593_v46 = vadd.f32 %v1577_v7, %v1545_v41  ;;  %v1498_v54 = vadd.f32 %v1482_v44, %v1449_v1  ;;  %v1613_v7 = vld [vmem:[#allocation2 + $0x188] sm:$0xff] }
 0x1ee   : > { %2609 = vmatprep.mubr.msk.f32.mxu1 %vm415_vm1, %v1752_v29  ;;  %v1530_v6 = vmul.f32 %v1657_v23, %v2925_v48  ;;  %v1578_v40 = vmul.f32 %v1705_v59, %v2929_v51  ;;  %v1434_v50 = vmul.f32 %v3528_v9, %v2903_v25  ;;  %v1483_v58 = vmul.f32 %v3545_v17, %v2922_v47  ;;  %v1661_v1 = vld [vmem:[#allocation2 + $0x189] sm:$0xff] }
 0x1ef   : > { %v1737_v27 = vadd.f32 %v1721_v13, %v1689_v45  ;;  %v1402_v30 = vadd.f32 %v1386_v34, %v1338_v12  ;;  %v1642_v18 = vadd.f32 %v1626_v57, %v1593_v46  ;;  %v1627_v43 = vmul.f32 %v3562_v16, %v2942_v2 }
 0x1f0   : > { %v1546_v15 = vadd.f32 %v1530_v6, %v1498_v54  ;;  %v1339_v53 = vmul.f32 %v1609_v42, %v2892_v10  ;;  %v1675_v62 = vmul.f32 %v1659_v37, %v2936_v61  ;;  %v1387_v0 = vmul.f32 %v1657_v23, %v2895_v11 }
 0x1f1   : > { %v1753_v21 = vadd.f32 %v3506_v52, %v1737_v27  ;;  %v1450_v36 = vadd.f32 %v1434_v50, %v1402_v30  ;;  %v1690_v14 = vadd.f32 %v1674_v28, %v1642_v18  ;;  %v1723_v4 = vmul.f32 %v3479_v55, %v3568_v33  ;;  %v1614_v27 = vld [vmem:[#allocation2 + $0x198] sm:$0xff] }
 0x1f2   : > { %v1594_v9 = vadd.f32 %v1578_v40, %v1546_v15  ;;  %v1531_v38 = vmul.f32 %v1658_v5, %v2925_v48  ;;  %v1403_v26 = vadd.f32 %v1387_v0, %v1339_v53  ;;  %v1435_v42 = vmul.f32 %v1705_v59, %v2903_v25  ;;  %v1709_v15 = vld [vmem:[#allocation2 + $0x18a] sm:$0xff] }
 0x1f3   : > { %2610 = vmatmul.mubr.msk.f32.gmra.mrb[24].mxu1 %vm415_vm1, %v1753_v21  ;;  %v1499_v3 = vadd.f32 %v1483_v58, %v1450_v36  ;;  %v1484_v8 = vmul.f32 %v3562_v16, %v2922_v47  ;;  %v1738_v22 = vadd.f32 %v1722_v56, %v1690_v14  ;;  %v1579_v23 = vmul.f32 %v1706_v31, %v2929_v51 }
 0x1f4   : > { %v1643_v32 = vadd.f32 %v1627_v43, %v1594_v9  ;;  %v1628_v24 = vmul.f32 %v1612_v19, %v2942_v2  ;;  %v1451_v20 = vadd.f32 %v1435_v42, %v1403_v26  ;;  %v1340_v63 = vmul.f32 %v3545_v17, %v2892_v10  ;;  %v1710_v9 = vld [vmem:[#allocation2 + $0x19a] sm:$0xff] }
 0x1f5   : > { %v1547_v49 = vadd.f32 %v1531_v38, %v1499_v3  ;;  %v1388_v44 = vmul.f32 %v1658_v5, %v2895_v11  ;;  %v1754_v59 = vadd.f32 %v3506_v52, %v1738_v22  ;;  %v1532_v13 = vmul.f32 %v1659_v37, %v2925_v48 }
 0x1f6   : > { %v1691_v60 = vadd.f32 %v1675_v62, %v1643_v32  ;;  %v1436_v57 = vmul.f32 %v1706_v31, %v2903_v25  ;;  %v1500_v41 = vadd.f32 %v1484_v8, %v1451_v20  ;;  %v1485_v45 = vmul.f32 %v1612_v19, %v2922_v47  ;;  %v1662_v62 = vld [vmem:[#allocation2 + $0x199] sm:$0xff] }
 0x1f7   : > { %v1595_v29 = vadd.f32 %v1579_v23, %v1547_v49  ;;  %v1404_v12 = vadd.f32 %v1388_v44, %v1340_v63  ;;  %2612 = vmatprep.mubr.msk.f32.mxu1 %vm415_vm1, %v1754_v59  ;;  %v1676_v17 = vmul.f32 %v1660_v39, %v2936_v61  ;;  %v1724_v5 = vmul.f32 %v3479_v55, %v1708_v35  ;;  %v1615_v8 = vld [vmem:[#allocation2 + $0x1a0] sm:$0xff] }
 0x1f8   : > { %v1739_v28 = vadd.f32 %v1723_v4, %v1691_v60  ;;  %v1580_v56 = vmul.f32 %v3568_v33, %v2929_v51  ;;  %v1548_v46 = vadd.f32 %v1532_v13, %v1500_v41  ;;  %v1629_v31 = vmul.f32 %v1613_v7, %v2942_v2  ;;  %v1663_v23 = vld [vmem:[#allocation2 + $0x1a1] sm:$0xff] }
 0x1f9   : > { %v1644_v34 = vadd.f32 %v1628_v24, %v1595_v29  ;;  %v1452_v54 = vadd.f32 %v1436_v57, %v1404_v12  ;;  %v1677_v40 = vmul.f32 %v1661_v1, %v2936_v61  ;;  %v1341_v30 = vmul.f32 %v3562_v16, %v2892_v10  ;;  %v1711_v63 = vld [vmem:[#allocation2 + $0x1a2] sm:$0xff] }
 0x1fa   : > { %v1755_v6 = vadd.f32 %v3506_v52, %v1739_v28  ;;  %v1389_v50 = vmul.f32 %v1659_v37, %v2895_v11  ;;  %v1596_v18 = vadd.f32 %v1580_v56, %v1548_v46  ;;  %v1533_v53 = vmul.f32 %v1660_v39, %v2925_v48 }
 0x1fb   : > { %v1692_v58 = vadd.f32 %v1676_v17, %v1644_v34  ;;  %v1501_v43 = vadd.f32 %v1485_v45, %v1452_v54  ;;  %v1581_v21 = vmul.f32 %v1708_v35, %v2929_v51  ;;  %v1437_v19 = vmul.f32 %v3568_v33, %v2903_v25 }
 0x1fc   : > { %2613 = vmatmul.mubr.msk.f32.gmra.mrb[26].mxu1 %vm415_vm1, %v1755_v6  ;;  %v1405_v36 = vadd.f32 %v1389_v50, %v1341_v30  ;;  %v1486_v0 = vmul.f32 %v1613_v7, %v2922_v47  ;;  %v1645_v16 = vadd.f32 %v1629_v31, %v1596_v18  ;;  %v1630_v37 = vmul.f32 %v1614_v27, %v2942_v2 }
 0x1fd   : > { %v1740_v10 = vadd.f32 %v1724_v5, %v1692_v58  ;;  %v1549_v11 = vadd.f32 %v1533_v53, %v1501_v43  ;;  %v1725_v14 = vmul.f32 %v3479_v55, %v1709_v15  ;;  %v1678_v42 = vmul.f32 %v1662_v62, %v2936_v61 }
 0x1fe   : > { %v1453_v4 = vadd.f32 %v1437_v19, %v1405_v36  ;;  %v1693_v3 = vadd.f32 %v1677_v40, %v1645_v16  ;;  %v1534_v25 = vmul.f32 %v1661_v1, %v2925_v48  ;;  %v1726_v32 = vmul.f32 %v3479_v55, %v1710_v9 }
 0x1ff   : > { %v1756_v38 = vadd.f32 %v3506_v52, %v1740_v10  ;;  %v1597_v26 = vadd.f32 %v1581_v21, %v1549_v11  ;;  %v1582_v49 = vmul.f32 %v1709_v15, %v2929_v51  ;;  %v1631_v39 = vmul.f32 %v1615_v8, %v2942_v2 }
 0x200   : > { %v1502_v22 = vadd.f32 %v1486_v0, %v1453_v4  ;;  %v1741_v47 = vadd.f32 %v1725_v14, %v1693_v3  ;;  %v1679_v59 = vmul.f32 %v1663_v23, %v2936_v61  ;;  %v1727_v13 = vmul.f32 %v3479_v55, %v1711_v63  ;;  %v3633_v61 = vld [vmem:[%s3843_s6] ss:$0 sm:$0xff] }
 0x201   : > { %2615 = vmatprep.mubr.msk.f32.mxu1 %vm415_vm1, %v1756_v38  ;;  %v1646_v33 = vadd.f32 %v1630_v37, %v1597_v26 }
 0x202   : > { %v1550_v24 = vadd.f32 %v1534_v25, %v1502_v22  ;;  %v1757_v35 = vadd.f32 %v3506_v52, %v1741_v47 }
 0x203   : > { %v1694_v20 = vadd.f32 %v1678_v42, %v1646_v33 }
 0x204   : > { %v1598_v44 = vadd.f32 %v1582_v49, %v1550_v24  ;;  %2616 = vmatmul.mubr.msk.f32.gmra.mrb[28].mxu1 %vm415_vm1, %v1757_v35 }
 0x205   : > { %v1742_v48 = vadd.f32 %v1726_v32, %v1694_v20 }
 0x206   : > { %v1647_v60 = vadd.f32 %v1631_v39, %v1598_v44 }
 0x207   : > { %v1758_v7 = vadd.f32 %v3506_v52, %v1742_v48 }
 0x208   : > { %v1695_v57 = vadd.f32 %v1679_v59, %v1647_v60 }
 0x209   : > { %2618 = vmatprep.mubr.msk.f32.mxu1 %vm415_vm1, %v1758_v7 }
 0x20a   : > { %v1743_v51 = vadd.f32 %v1727_v13, %v1695_v57 }
 0x20c   : > { %v1759_v2 = vadd.f32 %v3506_v52, %v1743_v51 }
 0x20e   : > { %2619 = vmatmul.mubr.msk.f32.gmra.mrb[30].mxu1 %vm415_vm1, %v1759_v2 }
 0x24f   : > { %v2575_v29 = vpop.f32.mrb[0].mxu1 }
 0x250   : > { %v1939_v41 = vadd.f32 %v2575_v29, %v3633_v61  ;;  %v1933_v1 = vpop.f32.mrb[1].mxu1 }
 0x251   : > { %v1934_v55 = vadd.f32 %v3633_v61, %v1933_v1 }
 0x252   : > { %v2093_v12 = vmax.f32 %v1939_v41, 0.0 }
 0x253   : > { %v2092_v45 = vmax.f32 %v1934_v55, 0.0 }
 0x254   : > { %2158 = vrot.lane.b32.xlu1 %v2093_v12, %s2676_s29 }
 0x255   : > { %2156 = vrot.lane.b32.xlu0 %v2092_v45, %s2676_s29 }
 0x259   : > { %v2578_v52 = vpop.f32.mrb[2].mxu1 }
 0x25a   : > { %v1949_v28 = vadd.f32 %v2578_v52, %v3633_v61  ;;  %v1943_v17 = vpop.f32.mrb[3].mxu1 }
 0x25b   : > { %v1944_v5 = vadd.f32 %v3633_v61, %v1943_v17 }
 0x25c   : > { %v2095_v56 = vmax.f32 %v1949_v28, 0.0 }
 0x25d   : > { %v2094_v34 = vmax.f32 %v1944_v5, 0.0 }
 0x25e   : > { %2162 = vrot.lane.b32.xlu1 %v2095_v56, %s2676_s29  ;;  %v2634_v56 = vld [vmem:[%s2738_s8 + $0x8] sm:$0xff] }
 0x25f   : > { %2160 = vrot.lane.b32.xlu0 %v2094_v34, %s2676_s29 }
 0x266   : > { %v2581_v46 = vpop.f32.mrb[4].mxu1 }
 0x267   : > { %v1959_v31 = vadd.f32 %v2581_v46, %v3633_v61  ;;  %v1953_v54 = vpop.f32.mrb[5].mxu1 }
 0x268   : > { %v1954_v6 = vadd.f32 %v3633_v61, %v1953_v54  ;;  %v2635_v54 = vld [vmem:[%s2738_s8] sm:$0xff] }
 0x269   : > { %v2097_v40 = vmax.f32 %v1959_v31, 0.0 }
 0x26a   : > { %v2096_v27 = vmax.f32 %v1954_v6, 0.0 }
 0x26b   : > { %2166 = vrot.lane.b32.xlu1 %v2097_v40, %s2676_s29 }
 0x26c   : > { %2164 = vrot.lane.b32.xlu0 %v2096_v27, %s2676_s29 }
 0x271   : > { %v2584_v30 = vpop.f32.mrb[6].mxu1 }
 0x272   : > { %v1969_v50 = vadd.f32 %v2584_v30, %v3633_v61  ;;  %v1963_v58 = vpop.f32.mrb[7].mxu1 }
 0x273   : > { %v1964_v18 = vadd.f32 %v3633_v61, %v1963_v58 }
 0x274   : > { %v2099_v15 = vmax.f32 %v1969_v50, 0.0 }
 0x275   : > { %v2098_v43 = vmax.f32 %v1964_v18, 0.0 }
 0x276   : > { %2170 = vrot.lane.b32.xlu1 %v2099_v15, %s2676_s29 }
 0x277   : > { %2168 = vrot.lane.b32.xlu0 %v2098_v43, %s2676_s29 }
 0x27a   : > { %v2587_v53 = vpop.f32.mrb[8].mxu1 }
 0x27b   : > { %v1979_v21 = vadd.f32 %v2587_v53, %v3633_v61  ;;  %v1973_v62 = vpop.f32.mrb[9].mxu1 }
 0x27c   : > { %v1974_v36 = vadd.f32 %v3633_v61, %v1973_v62  ;;  %v2636_v62 = vld [vmem:[%s2738_s8 + $0x18] sm:$0xff] }
 0x27d   : > { %v2101_v19 = vmax.f32 %v1979_v21, 0.0 }
 0x27e   : > { %v2100_v0 = vmax.f32 %v1974_v36, 0.0 }
 0x27f   : > { %2174 = vrot.lane.b32.xlu1 %v2101_v19, %s2676_s29 }
 0x280   : > { %2172 = vrot.lane.b32.xlu0 %v2100_v0, %s2676_s29 }
 0x285   : > { %v2590_v10 = vpop.f32.mrb[10].mxu1 }
 0x286   : > { %v1989_v16 = vadd.f32 %v2590_v10, %v3633_v61  ;;  %v1983_v11 = vpop.f32.mrb[11].mxu1  ;;  %v2637_v10 = vld [vmem:[%s2738_s8 + $0x10] sm:$0xff] }
 0x287   : > { %v1984_v37 = vadd.f32 %v3633_v61, %v1983_v11 }
 0x288   : > { %v2103_v14 = vmax.f32 %v1989_v16, 0.0 }
 0x289   : > { %v2102_v9 = vmax.f32 %v1984_v37, 0.0 }
 0x28a   : > { %2178 = vrot.lane.b32.xlu1 %v2103_v14, %s2676_s29 }
 0x28b   : > { %2176 = vrot.lane.b32.xlu0 %v2102_v9, %s2676_s29 }
 0x28e   : > { %v2593_v4 = vpop.f32.mrb[12].mxu1 }
 0x28f   : > { %v1999_v38 = vadd.f32 %v2593_v4, %v3633_v61  ;;  %v1993_v3 = vpop.f32.mrb[13].mxu1 }
 0x290   : > { %v1994_v26 = vadd.f32 %v3633_v61, %v1993_v3 }
 0x291   : > { %v2105_v42 = vmax.f32 %v1999_v38, 0.0 }
 0x292   : > { %v2104_v8 = vmax.f32 %v1994_v26, 0.0 }
 0x293   : > { %2182 = vrot.lane.b32.xlu1 %v2105_v42, %s2676_s29  ;;  %v2638_v42 = vld [vmem:[%s2738_s8 + $0x28] sm:$0xff] }
 0x294   : > { %2180 = vrot.lane.b32.xlu0 %v2104_v8, %s2676_s29 }
 0x299   : > { %v2596_v22 = vpop.f32.mrb[14].mxu1 }
 0x29a   : > { %v2009_v25 = vadd.f32 %v2596_v22, %v3633_v61  ;;  %v2003_v47 = vpop.f32.mrb[15].mxu1 }
 0x29b   : > { %v2004_v33 = vadd.f32 %v3633_v61, %v2003_v47 }
 0x29c   : > { %v2107_v32 = vmax.f32 %v2009_v25, 0.0  ;;  %v2639_v25 = vld [vmem:[%s2738_s8 + $0x20] sm:$0xff] }
 0x29d   : > { %v2106_v23 = vmax.f32 %v2004_v33, 0.0 }
 0x29e   : > { %2186 = vrot.lane.b32.xlu1 %v2107_v32, %s2676_s29 }
 0x29f   : > { %2184 = vrot.lane.b32.xlu0 %v2106_v23, %s2676_s29 }
 0x2a2   : > { %v2599_v24 = vpop.f32.mrb[16].mxu1 }
 0x2a3   : > { %v2019_v49 = vadd.f32 %v2599_v24, %v3633_v61  ;;  %v2013_v39 = vpop.f32.mrb[17].mxu1 }
 0x2a4   : > { %v2014_v35 = vadd.f32 %v3633_v61, %v2013_v39 }
 0x2a5   : > { %v2109_v20 = vmax.f32 %v2019_v49, 0.0 }
 0x2a6   : > { %v2108_v63 = vmax.f32 %v2014_v35, 0.0 }
 0x2a7   : > { %2190 = vrot.lane.b32.xlu1 %v2109_v20, %s2676_s29  ;;  %v2640_v20 = vld [vmem:[%s2738_s8 + $0x38] sm:$0xff] }
 0x2a8   : > { %2188 = vrot.lane.b32.xlu0 %v2108_v63, %s2676_s29 }
 0x2ab   : > { %v2602_v44 = vpop.f32.mrb[18].mxu1 }
 0x2ac   : > { %v2029_v59 = vadd.f32 %v2602_v44, %v3633_v61  ;;  %v2023_v48 = vpop.f32.mrb[19].mxu1 }
 0x2ad   : > { %v2024_v60 = vadd.f32 %v3633_v61, %v2023_v48 }
 0x2ae   : > { %v2111_v13 = vmax.f32 %v2029_v59, 0.0  ;;  %v2641_v59 = vld [vmem:[%s2738_s8 + $0x30] sm:$0xff] }
 0x2af   : > { %v2110_v7 = vmax.f32 %v2024_v60, 0.0  ;;  %v2642_v60 = vld [vmem:[%s2738_s8 + $0x48] sm:$0xff] }
 0x2b0   : > { %2194 = vrot.lane.b32.xlu1 %v2111_v13, %s2676_s29 }
 0x2b1   : > { %2192 = vrot.lane.b32.xlu0 %v2110_v7, %s2676_s29 }
 0x2b3   : > { %v2605_v57 = vpop.f32.mrb[20].mxu1 }
 0x2b4   : > { %v2039_v51 = vadd.f32 %v2605_v57, %v3633_v61  ;;  %v2033_v2 = vpop.f32.mrb[21].mxu1  ;;  %v2643_v57 = vld [vmem:[%s2738_s8 + $0x40] sm:$0xff] }
 0x2b5   : > { %v2034_v29 = vadd.f32 %v3633_v61, %v2033_v2 }
 0x2b6   : > { %v2113_v41 = vmax.f32 %v2039_v51, 0.0 }
 0x2b7   : > { %v2112_v1 = vmax.f32 %v2034_v29, 0.0  ;;  %v2644_v29 = vld [vmem:[%s2738_s8 + $0x58] sm:$0xff] }
 0x2b8   : > { %2198 = vrot.lane.b32.xlu1 %v2113_v41, %s2676_s29 }
 0x2b9   : > { %2196 = vrot.lane.b32.xlu0 %v2112_v1, %s2676_s29 }
 0x2bd   : > { %v2608_v55 = vpop.f32.mrb[22].mxu1 }
 0x2be   : > { %v2049_v12 = vadd.f32 %v2608_v55, %v3633_v61  ;;  %v2043_v45 = vpop.f32.mrb[23].mxu1  ;;  %v2645_v55 = vld [vmem:[%s2738_s8 + $0x50] sm:$0xff] }
 0x2bf   : > { %v2044_v52 = vadd.f32 %v3633_v61, %v2043_v45 }
 0x2c0   : > { %v2115_v28 = vmax.f32 %v2049_v12, 0.0 }
 0x2c1   : > { %v2114_v17 = vmax.f32 %v2044_v52, 0.0  ;;  %v2646_v52 = vld [vmem:[%s2738_s8 + $0x68] sm:$0xff] }
 0x2c2   : > { %2202 = vrot.lane.b32.xlu1 %v2115_v28, %s2676_s29 }
 0x2c3   : > { %2200 = vrot.lane.b32.xlu0 %v2114_v17, %s2676_s29 }
 0x2c6   : > { %v2159_v5 = vpop.permute.xlu1 %2158  ;;  %v2611_v31 = vpop.f32.mrb[24].mxu1 }
 0x2c7   : > { %v2253_v34 = vsel %vm415_vm1, %v2634_v56, %v2159_v5  ;;  %v2157_v46 = vpop.permute.xlu0 %2156  ;;  %v2059_v40 = vadd.f32 %v2611_v31, %v3633_v61  ;;  %v2053_v27 = vpop.f32.mrb[25].mxu1  ;;  %v2647_v5 = vld [vmem:[%s2738_s8 + $0x60] sm:$0xff] }
 0x2c8   : > { %2286 = vst.msk [vmem:[%s3687_s10 + $0x8] sm:$0xff] %vm2284_vm4, %v2253_v34  ;;  %v2252_v6 = vsel %vm415_vm1, %v2635_v54, %v2157_v46  ;;  %v2054_v30 = vadd.f32 %v3633_v61, %v2053_v27  ;;  %v2648_v46 = vld [vmem:[%s2738_s8 + $0x78] sm:$0xff] }
 0x2c9   : > { %2285 = vst.msk [vmem:[%s3687_s10] sm:$0xff] %vm2284_vm4, %v2252_v6  ;;  %v2117_v50 = vmax.f32 %v2059_v40, 0.0  ;;  %v2649_v6 = vld [vmem:[%s2738_s8 + $0x70] sm:$0xff] }
 0x2ca   : > { %v2116_v58 = vmax.f32 %v2054_v30, 0.0  ;;  %v2650_v30 = vld [vmem:[%s2738_s8 + $0x88] sm:$0xff] }
 0x2cb   : > { %2206 = vrot.lane.b32.xlu1 %v2117_v50, %s2676_s29 }
 0x2cc   : > { %2204 = vrot.lane.b32.xlu0 %v2116_v58, %s2676_s29 }
 0x2cf   : > { %v2614_v18 = vpop.f32.mrb[26].mxu1 }
 0x2d0   : > { %v2069_v15 = vadd.f32 %v2614_v18, %v3633_v61  ;;  %v2063_v43 = vpop.f32.mrb[27].mxu1  ;;  %v2163_v53 = vpop.permute.xlu1 %2162  ;;  %v2651_v18 = vld [vmem:[%s2738_s8 + $0x80] sm:$0xff] }
 0x2d1   : > { %v2064_v21 = vadd.f32 %v3633_v61, %v2063_v43  ;;  %v2255_v36 = vsel %vm415_vm1, %v2636_v62, %v2163_v53  ;;  %v2161_v19 = vpop.permute.xlu0 %2160  ;;  %v2652_v53 = vld [vmem:[%s2738_s8 + $0x98] sm:$0xff] }
 0x2d2   : > { %v2119_v0 = vmax.f32 %v2069_v15, 0.0  ;;  %2288 = vst.msk [vmem:[%s3687_s10 + $0x18] sm:$0xff] %vm2284_vm4, %v2255_v36  ;;  %v2254_v16 = vsel %vm415_vm1, %v2637_v10, %v2161_v19  ;;  %v2653_v36 = vld [vmem:[%s2738_s8 + $0x90] sm:$0xff]  ;;  %v2654_v10 = vld [vmem:[%s2738_s8 + $0xa8] sm:$0xff] }
 0x2d3   : > { %v2118_v11 = vmax.f32 %v2064_v21, 0.0  ;;  %2287 = vst.msk [vmem:[%s3687_s10 + $0x10] sm:$0xff] %vm2284_vm4, %v2254_v16 }
 0x2d4   : > { %2210 = vrot.lane.b32.xlu1 %v2119_v0, %s2676_s29 }
 0x2d5   : > { %2208 = vrot.lane.b32.xlu0 %v2118_v11, %s2676_s29 }
 0x2d7   : > { %v2617_v37 = vpop.f32.mrb[28].mxu1 }
 0x2d8   : > { %v2079_v14 = vadd.f32 %v2617_v37, %v3633_v61  ;;  %v2073_v9 = vpop.f32.mrb[29].mxu1  ;;  %v2655_v37 = vld [vmem:[%s2738_s8 + $0xa0] sm:$0xff] }
 0x2d9   : > { %v2074_v4 = vadd.f32 %v3633_v61, %v2073_v9 }
 0x2da   : > { %v2121_v38 = vmax.f32 %v2079_v14, 0.0 }
 0x2db   : > { %v2120_v3 = vmax.f32 %v2074_v4, 0.0  ;;  %v2656_v4 = vld [vmem:[%s2738_s8 + $0xb8] sm:$0xff] }
 0x2dc   : > { %2214 = vrot.lane.b32.xlu1 %v2121_v38, %s2676_s29 }
 0x2dd   : > { %v2167_v26 = vpop.permute.xlu1 %2166  ;;  %2212 = vrot.lane.b32.xlu0 %v2120_v3, %s2676_s29 }
 0x2de   : > { %v2257_v8 = vsel %vm415_vm1, %v2638_v42, %v2167_v26  ;;  %v2165_v22 = vpop.permute.xlu0 %2164  ;;  %v2657_v26 = vld [vmem:[%s2738_s8 + $0xb0] sm:$0xff] }
 0x2df   : > { %2290 = vst.msk [vmem:[%s3687_s10 + $0x28] sm:$0xff] %vm2284_vm4, %v2257_v8  ;;  %v2256_v47 = vsel %vm415_vm1, %v2639_v25, %v2165_v22  ;;  %v2658_v22 = vld [vmem:[%s2738_s8 + $0xc8] sm:$0xff] }
 0x2e0   : > { %2289 = vst.msk [vmem:[%s3687_s10 + $0x20] sm:$0xff] %vm2284_vm4, %v2256_v47 }
 0x2e1   : > { %v2620_v33 = vpop.f32.mrb[30].mxu1 }
 0x2e2   : > { %v2089_v32 = vadd.f32 %v2620_v33, %v3633_v61  ;;  %v2083_v23 = vpop.f32.mrb[31].mxu1  ;;  %v2659_v33 = vld [vmem:[%s2738_s8 + $0xc0] sm:$0xff] }
 0x2e3   : > { %v2084_v24 = vadd.f32 %v3633_v61, %v2083_v23 }
 0x2e4   : > { %v2123_v49 = vmax.f32 %v2089_v32, 0.0 }
 0x2e5   : > { %v2122_v39 = vmax.f32 %v2084_v24, 0.0  ;;  %v2660_v24 = vld [vmem:[%s2738_s8 + $0xd8] sm:$0xff] }
 0x2e6   : > { %2218 = vrot.lane.b32.xlu1 %v2123_v49, %s2676_s29 }
 0x2e7   : > { %2216 = vrot.lane.b32.xlu0 %v2122_v39, %s2676_s29 }
 0x2e8   : > { %v2171_v35 = vpop.permute.xlu1 %2170 }
 0x2e9   : > { %v2259_v63 = vsel %vm415_vm1, %v2640_v20, %v2171_v35  ;;  %v2169_v44 = vpop.permute.xlu0 %2168  ;;  %v2661_v35 = vld [vmem:[%s2738_s8 + $0xd0] sm:$0xff] }
 0x2ea   : > { %2292 = vst.msk [vmem:[%s3687_s10 + $0x38] sm:$0xff] %vm2284_vm4, %v2259_v63  ;;  %v2258_v61 = vsel %vm415_vm1, %v2641_v59, %v2169_v44  ;;  %v2662_v44 = vld [vmem:[%s2738_s8 + $0xe8] sm:$0xff] }
 0x2eb   : > { %2291 = vst.msk [vmem:[%s3687_s10 + $0x30] sm:$0xff] %vm2284_vm4, %v2258_v61 }
 0x2f1   : > { %v2175_v48 = vpop.permute.xlu1 %2174 }
 0x2f2   : > { %v2261_v13 = vsel %vm415_vm1, %v2642_v60, %v2175_v48  ;;  %v2173_v7 = vpop.permute.xlu0 %2172  ;;  %v2663_v48 = vld [vmem:[%s2738_s8 + $0xe0] sm:$0xff] }
 0x2f3   : > { %2294 = vst.msk [vmem:[%s3687_s10 + $0x48] sm:$0xff] %vm2284_vm4, %v2261_v13  ;;  %v2260_v51 = vsel %vm415_vm1, %v2643_v57, %v2173_v7  ;;  %v2664_v7 = vld [vmem:[%s2738_s8 + $0xf8] sm:$0xff] }
 0x2f4   : > { %2293 = vst.msk [vmem:[%s3687_s10 + $0x40] sm:$0xff] %vm2284_vm4, %v2260_v51 }
 0x2fc   : > { %v2179_v2 = vpop.permute.xlu1 %2178 }
 0x2fd   : > { %v2263_v41 = vsel %vm415_vm1, %v2644_v29, %v2179_v2  ;;  %v2177_v1 = vpop.permute.xlu0 %2176  ;;  %v2665_v2 = vld [vmem:[%s2738_s8 + $0xf0] sm:$0xff] }
 0x2fe   : > { %2296 = vst.msk [vmem:[%s3687_s10 + $0x58] sm:$0xff] %vm2284_vm4, %v2263_v41  ;;  %v2262_v12 = vsel %vm415_vm1, %v2645_v55, %v2177_v1 }
 0x2ff   : > { %2295 = vst.msk [vmem:[%s3687_s10 + $0x50] sm:$0xff] %vm2284_vm4, %v2262_v12 }
 0x305   : > { %v2183_v45 = vpop.permute.xlu1 %2182 }
 0x306   : > { %v2265_v28 = vsel %vm415_vm1, %v2646_v52, %v2183_v45  ;;  %v2181_v17 = vpop.permute.xlu0 %2180 }
 0x307   : > { %2298 = vst.msk [vmem:[%s3687_s10 + $0x68] sm:$0xff] %vm2284_vm4, %v2265_v28  ;;  %v2264_v56 = vsel %vm415_vm1, %v2647_v5, %v2181_v17 }
 0x308   : > { %2297 = vst.msk [vmem:[%s3687_s10 + $0x60] sm:$0xff] %vm2284_vm4, %v2264_v56 }
 0x310   : > { %v2187_v34 = vpop.permute.xlu1 %2186 }
 0x311   : > { %v2267_v31 = vsel %vm415_vm1, %v2648_v46, %v2187_v34  ;;  %v2185_v54 = vpop.permute.xlu0 %2184 }
 0x312   : > { %2300 = vst.msk [vmem:[%s3687_s10 + $0x78] sm:$0xff] %vm2284_vm4, %v2267_v31  ;;  %v2266_v40 = vsel %vm415_vm1, %v2649_v6, %v2185_v54 }
 0x313   : > { %2299 = vst.msk [vmem:[%s3687_s10 + $0x70] sm:$0xff] %vm2284_vm4, %v2266_v40 }
 0x319   : > { %v2191_v27 = vpop.permute.xlu1 %2190 }
 0x31a   : > { %v2269_v50 = vsel %vm415_vm1, %v2650_v30, %v2191_v27  ;;  %v2189_v58 = vpop.permute.xlu0 %2188 }
 0x31b   : > { %2302 = vst.msk [vmem:[%s3687_s10 + $0x88] sm:$0xff] %vm2284_vm4, %v2269_v50  ;;  %v2268_v15 = vsel %vm415_vm1, %v2651_v18, %v2189_v58 }
 0x31c   : > { %2301 = vst.msk [vmem:[%s3687_s10 + $0x80] sm:$0xff] %vm2284_vm4, %v2268_v15 }
 0x322   : > { %v2195_v43 = vpop.permute.xlu1 %2194 }
 0x323   : > { %v2271_v21 = vsel %vm415_vm1, %v2652_v53, %v2195_v43  ;;  %v2193_v62 = vpop.permute.xlu0 %2192 }
 0x324   : > { %2304 = vst.msk [vmem:[%s3687_s10 + $0x98] sm:$0xff] %vm2284_vm4, %v2271_v21  ;;  %v2270_v19 = vsel %vm415_vm1, %v2653_v36, %v2193_v62 }
 0x325   : > { %2303 = vst.msk [vmem:[%s3687_s10 + $0x90] sm:$0xff] %vm2284_vm4, %v2270_v19 }
 0x32a   : > { %v2199_v0 = vpop.permute.xlu1 %2198 }
 0x32b   : > { %v2273_v16 = vsel %vm415_vm1, %v2654_v10, %v2199_v0  ;;  %v2197_v11 = vpop.permute.xlu0 %2196 }
 0x32c   : > { %2306 = vst.msk [vmem:[%s3687_s10 + $0xa8] sm:$0xff] %vm2284_vm4, %v2273_v16  ;;  %v2272_v14 = vsel %vm415_vm1, %v2655_v37, %v2197_v11 }
 0x32d   : > { %2305 = vst.msk [vmem:[%s3687_s10 + $0xa0] sm:$0xff] %vm2284_vm4, %v2272_v14 }
 0x334   : > { %v2203_v9 = vpop.permute.xlu1 %2202 }
 0x335   : > { %v2275_v38 = vsel %vm415_vm1, %v2656_v4, %v2203_v9  ;;  %v2201_v3 = vpop.permute.xlu0 %2200 }
 0x336   : > { %2308 = vst.msk [vmem:[%s3687_s10 + $0xb8] sm:$0xff] %vm2284_vm4, %v2275_v38  ;;  %v2274_v42 = vsel %vm415_vm1, %v2657_v26, %v2201_v3 }
 0x337   : > { %2307 = vst.msk [vmem:[%s3687_s10 + $0xb0] sm:$0xff] %vm2284_vm4, %v2274_v42 }
 0x33d   : > { %v2207_v8 = vpop.permute.xlu1 %2206 }
 0x33e   : > { %v2277_v25 = vsel %vm415_vm1, %v2658_v22, %v2207_v8  ;;  %v2205_v47 = vpop.permute.xlu0 %2204 }
 0x33f   : > { %2310 = vst.msk [vmem:[%s3687_s10 + $0xc8] sm:$0xff] %vm2284_vm4, %v2277_v25  ;;  %v2276_v32 = vsel %vm415_vm1, %v2659_v33, %v2205_v47 }
 0x340   : > { %2309 = vst.msk [vmem:[%s3687_s10 + $0xc0] sm:$0xff] %vm2284_vm4, %v2276_v32 }
 0x346   : > { %v2211_v23 = vpop.permute.xlu1 %2210 }
 0x347   : > { %v2279_v49 = vsel %vm415_vm1, %v2660_v24, %v2211_v23  ;;  %v2209_v39 = vpop.permute.xlu0 %2208 }
 0x348   : > { %2312 = vst.msk [vmem:[%s3687_s10 + $0xd8] sm:$0xff] %vm2284_vm4, %v2279_v49  ;;  %v2278_v20 = vsel %vm415_vm1, %v2661_v35, %v2209_v39 }
 0x349   : > { %2311 = vst.msk [vmem:[%s3687_s10 + $0xd0] sm:$0xff] %vm2284_vm4, %v2278_v20 }
 0x34e   : > { %v2215_v63 = vpop.permute.xlu1 %2214 }
 0x34f   : > { %v2281_v59 = vsel %vm415_vm1, %v2662_v44, %v2215_v63  ;;  %v2213_v61 = vpop.permute.xlu0 %2212 }
 0x350   : > { %2314 = vst.msk [vmem:[%s3687_s10 + $0xe8] sm:$0xff] %vm2284_vm4, %v2281_v59  ;;  %v2280_v60 = vsel %vm415_vm1, %v2663_v48, %v2213_v61 }
 0x351   : > { %2313 = vst.msk [vmem:[%s3687_s10 + $0xe0] sm:$0xff] %vm2284_vm4, %v2280_v60 }
 0x358   : > { %v2219_v13 = vpop.permute.xlu1 %2218 }
 0x359   : > { %v2283_v57 = vsel %vm415_vm1, %v2664_v7, %v2219_v13  ;;  %v2217_v51 = vpop.permute.xlu0 %2216 }
 0x35a   : > { %2316 = vst.msk [vmem:[%s3687_s10 + $0xf8] sm:$0xff] %vm2284_vm4, %v2283_v57  ;;  %v2282_v29 = vsel %vm415_vm1, %v2665_v2, %v2217_v51 }
 0x35b   : > { %2315 = vst.msk [vmem:[%s3687_s10 + $0xf0] sm:$0xff] %vm2284_vm4, %v2282_v29 }
 0x35c PF: > { %s17_s24 = sadd.s32 1, %s2672_s24  }
 0x35d   : > { %p14_p4 = scmp.ge.s32.totalorder %s17_s24, 4  }
 0x35f   :  { %16 = sbr.rel (!%p14_p4) target bundleno = 1 (0x1), region = 84 }

</bundles_post_ra>
